<compile_context>
chip_gen: v7x
topology: tpu7x:2x2x1
jax: 0.10.0
libtpu: 0.0.40
codegen_flags: <defaults>
</compile_context>

<pallas_src>
from functools import partial

import jax
import jax.numpy as jnp
from jax.experimental import pallas as pl
from jax.experimental.pallas import tpu as pltpu


# ----------------------------- fused Pallas kernel --------------------------

def _classifier_kernel(xe_ref, xo_ref, w1_ref, b1_ref, w2_ref, b2_ref,
                       weff_ref, bf1_ref, wf2_ref, bf2_ref, o_ref):
    # xe_ref:   (7*B, 84)  bf16  conv1 im2col rows for even conv1-output rows 0,2,..,12
    #                            (row layout: plane-major, i.e. row = i_even*B + b)
    # xo_ref:   (6*B, 84)  bf16  same for odd conv1-output rows 1,3,..,11
    # w1_ref:   (84, 104)  bf16  conv1 expanded weight  (col = j*8 + c)
    # b1_ref:   (1, 104)   f32
    # w2_ref:   (3, 104, 384) bf16  conv2 expanded weight per kernel row (col = q*64 + d)
    # b2_ref:   (1, 384)   f32
    # weff_ref: (6, 384, 128) bf16  AvgPool+Flatten+FC1 folded weight (per conv2 row)
    # bf1_ref:  (1, 128)   f32
    # wf2_ref:  (128, 128) bf16  FC2 weight, classes zero-padded 10 -> 128
    # bf2_ref:  (1, 128)   f32   FC2 bias, padded classes = -1e30
    # o_ref:    (B, 128)   f32   softmax probabilities (classes 10..127 are 0)
    B = o_ref.shape[0]

    # ---- Conv2d(1, 8, 3, stride=2) + ReLU  (two big matmuls, M = 7B / 6B) ----
    y1e = jnp.maximum(
        jnp.dot(xe_ref[...], w1_ref[...], preferred_element_type=jnp.float32)
        + b1_ref[...], 0.0).astype(jnp.bfloat16)                     # (7B, 104)
    y1o = jnp.maximum(
        jnp.dot(xo_ref[...], w1_ref[...], preferred_element_type=jnp.float32)
        + b1_ref[...], 0.0).astype(jnp.bfloat16)                     # (6B, 104)

    # ---- Conv2d(8, 64, 3, stride=2) + ReLU ----------------------------------
    # Output row i2 needs conv1 rows 2i2, 2i2+1, 2i2+2 -> even planes 0..5,
    # odd planes 0..5, even planes 1..6: all contiguous row slices (no gathers).
    acc2 = jnp.dot(y1e[0:6 * B], w2_ref[0], preferred_element_type=jnp.float32)
    acc2 = acc2 + jnp.dot(y1o, w2_ref[1], preferred_element_type=jnp.float32)
    acc2 = acc2 + jnp.dot(y1e[B:7 * B], w2_ref[2], preferred_element_type=jnp.float32)
    y2 = jnp.maximum(acc2 + b2_ref[...], 0.0).astype(jnp.bfloat16)   # (6B, 384)

    # ---- AvgPool2d(3,2) + Flatten + Linear(256,128), folded into weff -------
    # One (B,384)@(384,128) matmul per conv2 output row; row 5 never enters a
    # pool window (weff[5] == 0), so it is skipped.
    acc_h = jnp.zeros((B, 128), jnp.float32)
    for p in range(5):
        acc_h = acc_h + jnp.dot(y2[p * B:(p + 1) * B], weff_ref[p],
                                preferred_element_type=jnp.float32)
    h1 = (acc_h + bf1_ref[...]).astype(jnp.bfloat16)                 # (B, 128)

    # ---- Linear(128, 10) (padded to 128 lanes) + Softmax(dim=1) -------------
    logits = jnp.dot(h1, wf2_ref[...], preferred_element_type=jnp.float32) \
        + bf2_ref[...]                                               # (B, 128)
    m = jnp.max(logits, axis=-1, keepdims=True)
    e = jnp.exp(logits - m)                                          # pad lanes -> 0
    s = jnp.sum(e, axis=-1, keepdims=True)
    o_ref[...] = e * pl.reciprocal(s, approx=False)


# ----------------------------- host-side weight prep ------------------------

def prepare_params(params):
    """Fold conv stride-2 column selection, AvgPool, the PyTorch flatten order,
    class padding and the bf16 casts into static host-precomputed tensors."""
    wc1, bc1, wc2, bc2, wf1, bf1, wf2, bf2 = params
    f32, bf16 = jnp.float32, jnp.bfloat16

    # Conv1 expanded weight: w1e84[ky*28 + m, j*8 + c] = wc1[c, 0, ky, m - 2j] (else 0)
    m_idx = jnp.arange(28)[:, None, None]
    j_idx = jnp.arange(13)[None, :, None]
    kx_idx = jnp.arange(3)[None, None, :]
    sel1 = (m_idx == 2 * j_idx + kx_idx).astype(f32)                  # (28, 13, 3)
    w1e = jnp.einsum('mjx,cyx->ymjc', sel1, wc1[:, 0].astype(f32))    # (3, 28, 13, 8)
    w1e84 = w1e.reshape(84, 104).astype(bf16)

    # Conv2 expanded weight: w2e[ky, j*8 + c, q*64 + d] = wc2[d, c, ky, j - 2q] (else 0)
    j2_idx = jnp.arange(13)[:, None, None]
    q_idx = jnp.arange(6)[None, :, None]
    sel2 = (j2_idx == 2 * q_idx + kx_idx).astype(f32)                 # (13, 6, 3)
    w2e = jnp.einsum('jqx,dcyx->yjcqd', sel2, wc2.astype(f32))        # (3, 13, 8, 6, 64)
    w2e = w2e.reshape(3, 104, 384).astype(bf16)

    # AvgPool(3,2) + Flatten + FC1 folded:
    # weff[i2, j2*64 + d, o] = (1/9) * sum_{pi,pj} 1[2pi<=i2<=2pi+2] 1[2pj<=j2<=2pj+2]
    #                                  * wf1[o, d*4 + pi*2 + pj]
    r_idx = jnp.arange(6)[:, None]
    p_idx = jnp.arange(2)[None, :]
    win = ((r_idx >= 2 * p_idx) & (r_idx <= 2 * p_idx + 2)).astype(f32)   # (6, 2)
    wf1r = wf1.astype(f32).reshape(128, 64, 2, 2)                     # (o, d, pi, pj)
    weff = jnp.einsum('ip,jq,odpq->ijdo', win, win, wf1r) / 9.0       # (6, 6, 64, 128)
    weff = weff.reshape(6, 384, 128).astype(bf16)

    # FC2 padded to 128 classes; padded class bias = -1e30 -> softmax prob exactly 0.
    wf2p = jnp.zeros((128, 128), f32).at[:, :10].set(wf2.astype(f32).T).astype(bf16)
    bf2p = jnp.full((1, 128), -1e30, f32).at[0, :10].set(bf2.astype(f32))

    b1row = jnp.tile(bc1.astype(f32), 13).reshape(1, 104)             # bias per (j, c)
    b2row = jnp.tile(bc2.astype(f32), 6).reshape(1, 384)              # bias per (q, d)
    bf1row = bf1.astype(f32).reshape(1, 128)
    return (w1e84, b1row, w2e, b2row, weff, bf1row, wf2p, bf2p)


# ----------------------------- forward (single pallas_call) -----------------

def _round_up(x, m):
    return (x + m - 1) // m * m


@partial(jax.jit, static_argnames=("block_b",))
def classifier_forward(x_nchw, prepared, block_b=128):
    w1e84, b1row, w2e, b2row, weff, bf1row, wf2p, bf2p = prepared
    N = x_nchw.shape[0]
    assert x_nchw.shape[1:] == (1, 28, 28)

    # Batch block size: multiple of 16 (bf16 sublane tile) so all in-kernel row
    # slices are tile-aligned; at the default 128 the per-step VMEM is ~5-6 MB.
    B = min(_round_up(N, 16), _round_up(block_b, 16))
    Np = _round_up(N, B)
    nblk = Np // B

    x = x_nchw.reshape(N, 28, 28).astype(jnp.float32)
    x = jnp.pad(x, ((0, Np - N), (0, 0), (0, 0)))

    # Row-only im2col for conv1 (the stride-2 column selection lives in w1e84):
    #   rows[i, n, ky*28 + m] = x[n, 2*i + ky, m]      i = conv1 output row (0..12)
    rows = jnp.stack([x[:, 2 * i:2 * i + 3, :].reshape(Np, 84) for i in range(13)],
                     axis=0).astype(jnp.bfloat16)                     # (13, Np, 84)

    # De-interleave even/odd conv1 output rows and pre-chunk to the kernel's
    # (batch-block, plane-major) row order so every kernel read is contiguous.
    def chunk(r):                                   # (P, Np, 84) -> (nblk*P*B, 84)
        P = r.shape[0]
        return (r.reshape(P, nblk, B, 84)
                 .transpose(1, 0, 2, 3)
                 .reshape(nblk * P * B, 84))

    x_even = chunk(rows[0::2])                      # conv1 rows 0,2,...,12
    x_odd = chunk(rows[1::2])                       # conv1 rows 1,3,...,11

    out = pl.pallas_call(
        _classifier_kernel,
        out_shape=jax.ShapeDtypeStruct((Np, 128), jnp.float32),
        grid=(nblk,),
        in_specs=[
            pl.BlockSpec((7 * B, 84), lambda nb: (nb, 0)),      # x_even
            pl.BlockSpec((6 * B, 84), lambda nb: (nb, 0)),      # x_odd
            pl.BlockSpec((84, 104), lambda nb: (0, 0)),         # w1e84
            pl.BlockSpec((1, 104), lambda nb: (0, 0)),          # b1
            pl.BlockSpec((3, 104, 384), lambda nb: (0, 0, 0)),  # w2e
            pl.BlockSpec((1, 384), lambda nb: (0, 0)),          # b2
            pl.BlockSpec((6, 384, 128), lambda nb: (0, 0, 0)),  # weff
            pl.BlockSpec((1, 128), lambda nb: (0, 0)),          # bf1
            pl.BlockSpec((128, 128), lambda nb: (0, 0)),        # wf2 (padded)
            pl.BlockSpec((1, 128), lambda nb: (0, 0)),          # bf2 (padded)
        ],
        out_specs=pl.BlockSpec((B, 128), lambda nb: (nb, 0)),
        compiler_params=pltpu.CompilerParams(
            dimension_semantics=("parallel",)),
    )(x_even, x_odd, w1e84, b1row, w2e, b2row, weff, bf1row, wf2p, bf2p)

    return out[:N, :10]


# ----------------------------- pure-JAX reference ---------------------------

def reference_forward(x_nchw, params):
    wc1, bc1, wc2, bc2, wf1, bf1, wf2, bf2 = params
    dn = ('NCHW', 'OIHW', 'NCHW')
    y = jax.lax.conv_general_dilated(x_nchw, wc1, (2, 2), 'VALID',
                                     dimension_numbers=dn)
    y = jax.nn.relu(y + bc1[None, :, None, None])
    y = jax.lax.conv_general_dilated(y, wc2, (2, 2), 'VALID',
                                     dimension_numbers=dn)
    y = jax.nn.relu(y + bc2[None, :, None, None])
    y = jax.lax.reduce_window(y, 0.0, jax.lax.add,
                              (1, 1, 3, 3), (1, 1, 2, 2), 'VALID') / 9.0
    flat = y.reshape(y.shape[0], -1)          # PyTorch (C, H, W) flatten order
    h = flat @ wf1.T + bf1                    # Dropout = identity (eval)
    logits = h @ wf2.T + bf2                  # Dropout = identity (eval)
    return jax.nn.softmax(logits, axis=1)


# ----------------------------- params / demo --------------------------------

def init_params(key):
    ks = jax.random.split(key, 8)
    wc1 = 0.4 * jax.random.normal(ks[0], (8, 1, 3, 3), jnp.float32)
    bc1 = 0.1 * jax.random.normal(ks[1], (8,), jnp.float32)
    wc2 = 0.12 * jax.random.normal(ks[2], (64, 8, 3, 3), jnp.float32)
    bc2 = 0.1 * jax.random.normal(ks[3], (64,), jnp.float32)
    wf1 = 0.06 * jax.random.normal(ks[4], (128, 256), jnp.float32)
    bf1 = 0.05 * jax.random.normal(ks[5], (128,), jnp.float32)
    wf2 = 0.15 * jax.random.normal(ks[6], (10, 128), jnp.float32)
    bf2 = 0.05 * jax.random.normal(ks[7], (10,), jnp.float32)
    return (wc1, bc1, wc2, bc2, wf1, bf1, wf2, bf2)


if __name__ == "__main__":
    key = jax.random.PRNGKey(0)
    kx, kp = jax.random.split(key)
    # Input must be (N, 1, 28, 28) so that the flattened size is 64*2*2 = 256.
    x = jax.random.normal(kx, (2, 1, 28, 28), jnp.float32)
    params = init_params(kp)
    prepared = prepare_params(params)

    out = classifier_forward(x, prepared)
    out = jax.block_until_ready(out)

    assert out.shape == (2, 10)
    assert bool(jnp.all(jnp.abs(jnp.sum(out, axis=-1) - 1.0) < 1e-3))
    assert bool(jnp.all(out >= 0.0))

    # Compare against a pure-JAX f32 reference (bf16 MXU operands -> small drift).
    ref = jax.block_until_ready(reference_forward(x, params))
    max_diff = float(jnp.max(jnp.abs(out - ref)))
    assert max_diff < 5e-2, f"mismatch vs reference: {max_diff}"

    print("KERNEL_OK")
</pallas_src>

<mosaic_0001>
module attributes {stable_mosaic.version = 11 : i64} {
  func.func @_classifier_kernel(%arg0: i32, %arg1: memref<112x84xbf16, #tpu.memory_space<vmem>>, %arg2: memref<96x84xbf16, #tpu.memory_space<vmem>>, %arg3: memref<84x104xbf16, #tpu.memory_space<vmem>>, %arg4: memref<1x104xf32, #tpu.memory_space<vmem>>, %arg5: memref<3x104x384xbf16, #tpu.memory_space<vmem>>, %arg6: memref<1x384xf32, #tpu.memory_space<vmem>>, %arg7: memref<6x384x128xbf16, #tpu.memory_space<vmem>>, %arg8: memref<1x128xf32, #tpu.memory_space<vmem>>, %arg9: memref<128x128xbf16, #tpu.memory_space<vmem>>, %arg10: memref<1x128xf32, #tpu.memory_space<vmem>>, %arg11: memref<16x128xf32, #tpu.memory_space<vmem>>) attributes {dimension_semantics = [#tpu.dimension_semantics<parallel>], iteration_bounds = array<i64: 1>, scalar_prefetch = 0 : i64, scratch_operands = 0 : i64, tpu.core_type = #tpu.core_type<tc>, window_params = [{transform_indices = @transform_0, window_bounds = array<i64: 112, 84>}, {transform_indices = @transform_1, window_bounds = array<i64: 96, 84>}, {pipeline_mode = #tpu.pipeline_mode<synchronous>, transform_indices = @transform_2, window_bounds = array<i64: 84, 104>}, {pipeline_mode = #tpu.pipeline_mode<synchronous>, transform_indices = @transform_3, window_bounds = array<i64: 1, 104>}, {pipeline_mode = #tpu.pipeline_mode<synchronous>, transform_indices = @transform_4, window_bounds = array<i64: 3, 104, 384>}, {pipeline_mode = #tpu.pipeline_mode<synchronous>, transform_indices = @transform_5, window_bounds = array<i64: 1, 384>}, {pipeline_mode = #tpu.pipeline_mode<synchronous>, transform_indices = @transform_6, window_bounds = array<i64: 6, 384, 128>}, {pipeline_mode = #tpu.pipeline_mode<synchronous>, transform_indices = @transform_7, window_bounds = array<i64: 1, 128>}, {pipeline_mode = #tpu.pipeline_mode<synchronous>, transform_indices = @transform_8, window_bounds = array<i64: 128, 128>}, {pipeline_mode = #tpu.pipeline_mode<synchronous>, transform_indices = @transform_9, window_bounds = array<i64: 1, 128>}, {transform_indices = @transform_10, window_bounds = array<i64: 16, 128>}]} {
    %c0 = arith.constant 0 : index
    %c0_0 = arith.constant 0 : index
    %0 = vector.load %arg1[%c0, %c0_0] : memref<112x84xbf16, #tpu.memory_space<vmem>>, vector<112x84xbf16>
    %c0_1 = arith.constant 0 : index
    %c0_2 = arith.constant 0 : index
    %1 = vector.load %arg3[%c0_1, %c0_2] : memref<84x104xbf16, #tpu.memory_space<vmem>>, vector<84x104xbf16>
    %cst = arith.constant dense<0.000000e+00> : vector<112x104xf32>
    %2 = tpu.matmul %0, %1, %cst {dimension_numbers = #tpu.dot_dimension_numbers<[1], [0], [0], [1], [0, 0, 1, 1], [], []>} : vector<112x84xbf16>, vector<84x104xbf16>, vector<112x104xf32> -> vector<112x104xf32>
    %c0_3 = arith.constant 0 : index
    %c0_4 = arith.constant 0 : index
    %3 = vector.load %arg4[%c0_3, %c0_4] : memref<1x104xf32, #tpu.memory_space<vmem>>, vector<1x104xf32>
    %4 = vector.broadcast %3 : vector<1x104xf32> to vector<112x104xf32>
    %5 = arith.addf %2, %4 : vector<112x104xf32>
    %cst_5 = arith.constant 0.000000e+00 : f32
    %6 = vector.broadcast %cst_5 : f32 to vector<112x104xf32>
    %7 = arith.maximumf %5, %6 : vector<112x104xf32>
    %8 = arith.truncf %7 : vector<112x104xf32> to vector<112x104xbf16>
    %c0_6 = arith.constant 0 : index
    %c0_7 = arith.constant 0 : index
    %9 = vector.load %arg2[%c0_6, %c0_7] : memref<96x84xbf16, #tpu.memory_space<vmem>>, vector<96x84xbf16>
    %c0_8 = arith.constant 0 : index
    %c0_9 = arith.constant 0 : index
    %10 = vector.load %arg3[%c0_8, %c0_9] : memref<84x104xbf16, #tpu.memory_space<vmem>>, vector<84x104xbf16>
    %cst_10 = arith.constant dense<0.000000e+00> : vector<96x104xf32>
    %11 = tpu.matmul %9, %10, %cst_10 {dimension_numbers = #tpu.dot_dimension_numbers<[1], [0], [0], [1], [0, 0, 1, 1], [], []>} : vector<96x84xbf16>, vector<84x104xbf16>, vector<96x104xf32> -> vector<96x104xf32>
    %c0_11 = arith.constant 0 : index
    %c0_12 = arith.constant 0 : index
    %12 = vector.load %arg4[%c0_11, %c0_12] : memref<1x104xf32, #tpu.memory_space<vmem>>, vector<1x104xf32>
    %13 = vector.broadcast %12 : vector<1x104xf32> to vector<96x104xf32>
    %14 = arith.addf %11, %13 : vector<96x104xf32>
    %cst_13 = arith.constant 0.000000e+00 : f32
    %15 = vector.broadcast %cst_13 : f32 to vector<96x104xf32>
    %16 = arith.maximumf %14, %15 : vector<96x104xf32>
    %17 = arith.truncf %16 : vector<96x104xf32> to vector<96x104xbf16>
    %18 = vector.extract_strided_slice %8 {offsets = [0, 0], sizes = [96, 104], strides = [1, 1]} : vector<112x104xbf16> to vector<96x104xbf16>
    %c0_14 = arith.constant 0 : index
    %c0_15 = arith.constant 0 : index
    %c0_16 = arith.constant 0 : index
    %19 = vector.load %arg5[%c0_14, %c0_15, %c0_16] : memref<3x104x384xbf16, #tpu.memory_space<vmem>>, vector<1x104x384xbf16>
    %20 = vector.shape_cast %19 : vector<1x104x384xbf16> to vector<104x384xbf16>
    %cst_17 = arith.constant dense<0.000000e+00> : vector<96x384xf32>
    %21 = tpu.matmul %18, %20, %cst_17 {dimension_numbers = #tpu.dot_dimension_numbers<[1], [0], [0], [1], [0, 0, 1, 1], [], []>} : vector<96x104xbf16>, vector<104x384xbf16>, vector<96x384xf32> -> vector<96x384xf32>
    %c1 = arith.constant 1 : index
    %c0_18 = arith.constant 0 : index
    %c0_19 = arith.constant 0 : index
    %22 = vector.load %arg5[%c1, %c0_18, %c0_19] : memref<3x104x384xbf16, #tpu.memory_space<vmem>>, vector<1x104x384xbf16>
    %23 = vector.shape_cast %22 : vector<1x104x384xbf16> to vector<104x384xbf16>
    %cst_20 = arith.constant dense<0.000000e+00> : vector<96x384xf32>
    %24 = tpu.matmul %17, %23, %cst_20 {dimension_numbers = #tpu.dot_dimension_numbers<[1], [0], [0], [1], [0, 0, 1, 1], [], []>} : vector<96x104xbf16>, vector<104x384xbf16>, vector<96x384xf32> -> vector<96x384xf32>
    %25 = arith.addf %21, %24 : vector<96x384xf32>
    %26 = vector.extract_strided_slice %8 {offsets = [16, 0], sizes = [96, 104], strides = [1, 1]} : vector<112x104xbf16> to vector<96x104xbf16>
    %c2 = arith.constant 2 : index
    %c0_21 = arith.constant 0 : index
    %c0_22 = arith.constant 0 : index
    %27 = vector.load %arg5[%c2, %c0_21, %c0_22] : memref<3x104x384xbf16, #tpu.memory_space<vmem>>, vector<1x104x384xbf16>
    %28 = vector.shape_cast %27 : vector<1x104x384xbf16> to vector<104x384xbf16>
    %cst_23 = arith.constant dense<0.000000e+00> : vector<96x384xf32>
    %29 = tpu.matmul %26, %28, %cst_23 {dimension_numbers = #tpu.dot_dimension_numbers<[1], [0], [0], [1], [0, 0, 1, 1], [], []>} : vector<96x104xbf16>, vector<104x384xbf16>, vector<96x384xf32> -> vector<96x384xf32>
    %30 = arith.addf %25, %29 : vector<96x384xf32>
    %c0_24 = arith.constant 0 : index
    %c0_25 = arith.constant 0 : index
    %31 = vector.load %arg6[%c0_24, %c0_25] : memref<1x384xf32, #tpu.memory_space<vmem>>, vector<1x384xf32>
    %32 = vector.broadcast %31 : vector<1x384xf32> to vector<96x384xf32>
    %33 = arith.addf %30, %32 : vector<96x384xf32>
    %cst_26 = arith.constant 0.000000e+00 : f32
    %34 = vector.broadcast %cst_26 : f32 to vector<96x384xf32>
    %35 = arith.maximumf %33, %34 : vector<96x384xf32>
    %36 = arith.truncf %35 : vector<96x384xf32> to vector<96x384xbf16>
    %cst_27 = arith.constant 0.000000e+00 : f32
    %37 = vector.broadcast %cst_27 : f32 to vector<16x128xf32>
    %38 = vector.extract_strided_slice %36 {offsets = [0, 0], sizes = [16, 384], strides = [1, 1]} : vector<96x384xbf16> to vector<16x384xbf16>
    %c0_28 = arith.constant 0 : index
    %c0_29 = arith.constant 0 : index
    %c0_30 = arith.constant 0 : index
    %39 = vector.load %arg7[%c0_28, %c0_29, %c0_30] : memref<6x384x128xbf16, #tpu.memory_space<vmem>>, vector<1x384x128xbf16>
    %40 = vector.shape_cast %39 : vector<1x384x128xbf16> to vector<384x128xbf16>
    %cst_31 = arith.constant dense<0.000000e+00> : vector<16x128xf32>
    %41 = tpu.matmul %38, %40, %cst_31 {dimension_numbers = #tpu.dot_dimension_numbers<[1], [0], [0], [1], [0, 0, 1, 1], [], []>} : vector<16x384xbf16>, vector<384x128xbf16>, vector<16x128xf32> -> vector<16x128xf32>
    %42 = arith.addf %37, %41 : vector<16x128xf32>
    %43 = vector.extract_strided_slice %36 {offsets = [16, 0], sizes = [16, 384], strides = [1, 1]} : vector<96x384xbf16> to vector<16x384xbf16>
    %c1_32 = arith.constant 1 : index
    %c0_33 = arith.constant 0 : index
    %c0_34 = arith.constant 0 : index
    %44 = vector.load %arg7[%c1_32, %c0_33, %c0_34] : memref<6x384x128xbf16, #tpu.memory_space<vmem>>, vector<1x384x128xbf16>
    %45 = vector.shape_cast %44 : vector<1x384x128xbf16> to vector<384x128xbf16>
    %cst_35 = arith.constant dense<0.000000e+00> : vector<16x128xf32>
    %46 = tpu.matmul %43, %45, %cst_35 {dimension_numbers = #tpu.dot_dimension_numbers<[1], [0], [0], [1], [0, 0, 1, 1], [], []>} : vector<16x384xbf16>, vector<384x128xbf16>, vector<16x128xf32> -> vector<16x128xf32>
    %47 = arith.addf %42, %46 : vector<16x128xf32>
    %48 = vector.extract_strided_slice %36 {offsets = [32, 0], sizes = [16, 384], strides = [1, 1]} : vector<96x384xbf16> to vector<16x384xbf16>
    %c2_36 = arith.constant 2 : index
    %c0_37 = arith.constant 0 : index
    %c0_38 = arith.constant 0 : index
    %49 = vector.load %arg7[%c2_36, %c0_37, %c0_38] : memref<6x384x128xbf16, #tpu.memory_space<vmem>>, vector<1x384x128xbf16>
    %50 = vector.shape_cast %49 : vector<1x384x128xbf16> to vector<384x128xbf16>
    %cst_39 = arith.constant dense<0.000000e+00> : vector<16x128xf32>
    %51 = tpu.matmul %48, %50, %cst_39 {dimension_numbers = #tpu.dot_dimension_numbers<[1], [0], [0], [1], [0, 0, 1, 1], [], []>} : vector<16x384xbf16>, vector<384x128xbf16>, vector<16x128xf32> -> vector<16x128xf32>
    %52 = arith.addf %47, %51 : vector<16x128xf32>
    %53 = vector.extract_strided_slice %36 {offsets = [48, 0], sizes = [16, 384], strides = [1, 1]} : vector<96x384xbf16> to vector<16x384xbf16>
    %c3 = arith.constant 3 : index
    %c0_40 = arith.constant 0 : index
    %c0_41 = arith.constant 0 : index
    %54 = vector.load %arg7[%c3, %c0_40, %c0_41] : memref<6x384x128xbf16, #tpu.memory_space<vmem>>, vector<1x384x128xbf16>
    %55 = vector.shape_cast %54 : vector<1x384x128xbf16> to vector<384x128xbf16>
    %cst_42 = arith.constant dense<0.000000e+00> : vector<16x128xf32>
    %56 = tpu.matmul %53, %55, %cst_42 {dimension_numbers = #tpu.dot_dimension_numbers<[1], [0], [0], [1], [0, 0, 1, 1], [], []>} : vector<16x384xbf16>, vector<384x128xbf16>, vector<16x128xf32> -> vector<16x128xf32>
    %57 = arith.addf %52, %56 : vector<16x128xf32>
    %58 = vector.extract_strided_slice %36 {offsets = [64, 0], sizes = [16, 384], strides = [1, 1]} : vector<96x384xbf16> to vector<16x384xbf16>
    %c4 = arith.constant 4 : index
    %c0_43 = arith.constant 0 : index
    %c0_44 = arith.constant 0 : index
    %59 = vector.load %arg7[%c4, %c0_43, %c0_44] : memref<6x384x128xbf16, #tpu.memory_space<vmem>>, vector<1x384x128xbf16>
    %60 = vector.shape_cast %59 : vector<1x384x128xbf16> to vector<384x128xbf16>
    %cst_45 = arith.constant dense<0.000000e+00> : vector<16x128xf32>
    %61 = tpu.matmul %58, %60, %cst_45 {dimension_numbers = #tpu.dot_dimension_numbers<[1], [0], [0], [1], [0, 0, 1, 1], [], []>} : vector<16x384xbf16>, vector<384x128xbf16>, vector<16x128xf32> -> vector<16x128xf32>
    %62 = arith.addf %57, %61 : vector<16x128xf32>
    %c0_46 = arith.constant 0 : index
    %c0_47 = arith.constant 0 : index
    %63 = vector.load %arg8[%c0_46, %c0_47] : memref<1x128xf32, #tpu.memory_space<vmem>>, vector<1x128xf32>
    %64 = vector.broadcast %63 : vector<1x128xf32> to vector<16x128xf32>
    %65 = arith.addf %62, %64 : vector<16x128xf32>
    %66 = arith.truncf %65 : vector<16x128xf32> to vector<16x128xbf16>
    %c0_48 = arith.constant 0 : index
    %c0_49 = arith.constant 0 : index
    %67 = vector.load %arg9[%c0_48, %c0_49] : memref<128x128xbf16, #tpu.memory_space<vmem>>, vector<128x128xbf16>
    %cst_50 = arith.constant dense<0.000000e+00> : vector<16x128xf32>
    %68 = tpu.matmul %66, %67, %cst_50 {dimension_numbers = #tpu.dot_dimension_numbers<[1], [0], [0], [1], [0, 0, 1, 1], [], []>} : vector<16x128xbf16>, vector<128x128xbf16>, vector<16x128xf32> -> vector<16x128xf32>
    %c0_51 = arith.constant 0 : index
    %c0_52 = arith.constant 0 : index
    %69 = vector.load %arg10[%c0_51, %c0_52] : memref<1x128xf32, #tpu.memory_space<vmem>>, vector<1x128xf32>
    %70 = vector.broadcast %69 : vector<1x128xf32> to vector<16x128xf32>
    %71 = arith.addf %68, %70 : vector<16x128xf32>
    %cst_53 = arith.constant dense<0xFF800000> : vector<16xf32>
    %72 = vector.multi_reduction <maximumf>, %71, %cst_53 [1] : vector<16x128xf32> to vector<16xf32>
    %73 = vector.shape_cast %72 : vector<16xf32> to vector<16x1xf32>
    %74 = vector.broadcast %73 : vector<16x1xf32> to vector<16x128xf32>
    %75 = arith.subf %71, %74 : vector<16x128xf32>
    %76 = math.exp %75 : vector<16x128xf32>
    %cst_54 = arith.constant dense<0.000000e+00> : vector<16xf32>
    %77 = vector.multi_reduction <add>, %76, %cst_54 [1] : vector<16x128xf32> to vector<16xf32>
    %78 = vector.shape_cast %77 : vector<16xf32> to vector<16x1xf32>
    %79 = tpu.reciprocal %78 : vector<16x1xf32> -> vector<16x1xf32>
    %80 = vector.broadcast %79 : vector<16x1xf32> to vector<16x128xf32>
    %81 = arith.mulf %76, %80 : vector<16x128xf32>
    %c0_55 = arith.constant 0 : index
    %c0_56 = arith.constant 0 : index
    %82 = vector.load %arg11[%c0_55, %c0_56] : memref<16x128xf32, #tpu.memory_space<vmem>>, vector<16x128xf32>
    tpu.vector_store %arg11[%c0_55, %c0_56], %81 {strides = array<i32>} : memref<16x128xf32, #tpu.memory_space<vmem>>, vector<16x128xf32>,
    return
  }
  func.func @transform_0(%arg0: i32) -> (i32, i32) {
    %c0_i32 = arith.constant 0 : i32
    %c0_i32_0 = arith.constant 0 : i32
    return %arg0, %c0_i32 : i32, i32
  }
  func.func @transform_1(%arg0: i32) -> (i32, i32) {
    %c0_i32 = arith.constant 0 : i32
    %c0_i32_0 = arith.constant 0 : i32
    return %arg0, %c0_i32 : i32, i32
  }
  func.func @transform_2(%arg0: i32) -> (i32, i32) {
    %c0_i32 = arith.constant 0 : i32
    %c0_i32_0 = arith.constant 0 : i32
    %c0_i32_1 = arith.constant 0 : i32
    return %c0_i32, %c0_i32_0 : i32, i32
  }
  func.func @transform_3(%arg0: i32) -> (i32, i32) {
    %c0_i32 = arith.constant 0 : i32
    %c0_i32_0 = arith.constant 0 : i32
    %c0_i32_1 = arith.constant 0 : i32
    return %c0_i32, %c0_i32_0 : i32, i32
  }
  func.func @transform_4(%arg0: i32) -> (i32, i32, i32) {
    %c0_i32 = arith.constant 0 : i32
    %c0_i32_0 = arith.constant 0 : i32
    %c0_i32_1 = arith.constant 0 : i32
    %c0_i32_2 = arith.constant 0 : i32
    return %c0_i32, %c0_i32_0, %c0_i32_1 : i32, i32, i32
  }
  func.func @transform_5(%arg0: i32) -> (i32, i32) {
    %c0_i32 = arith.constant 0 : i32
    %c0_i32_0 = arith.constant 0 : i32
    %c0_i32_1 = arith.constant 0 : i32
    return %c0_i32, %c0_i32_0 : i32, i32
  }
  func.func @transform_6(%arg0: i32) -> (i32, i32, i32) {
    %c0_i32 = arith.constant 0 : i32
    %c0_i32_0 = arith.constant 0 : i32
    %c0_i32_1 = arith.constant 0 : i32
    %c0_i32_2 = arith.constant 0 : i32
    return %c0_i32, %c0_i32_0, %c0_i32_1 : i32, i32, i32
  }
  func.func @transform_7(%arg0: i32) -> (i32, i32) {
    %c0_i32 = arith.constant 0 : i32
    %c0_i32_0 = arith.constant 0 : i32
    %c0_i32_1 = arith.constant 0 : i32
    return %c0_i32, %c0_i32_0 : i32, i32
  }
  func.func @transform_8(%arg0: i32) -> (i32, i32) {
    %c0_i32 = arith.constant 0 : i32
    %c0_i32_0 = arith.constant 0 : i32
    %c0_i32_1 = arith.constant 0 : i32
    return %c0_i32, %c0_i32_0 : i32, i32
  }
  func.func @transform_9(%arg0: i32) -> (i32, i32) {
    %c0_i32 = arith.constant 0 : i32
    %c0_i32_0 = arith.constant 0 : i32
    %c0_i32_1 = arith.constant 0 : i32
    return %c0_i32, %c0_i32_0 : i32, i32
  }
  func.func @transform_10(%arg0: i32) -> (i32, i32) {
    %c0_i32 = arith.constant 0 : i32
    %c0_i32_0 = arith.constant 0 : i32
    return %arg0, %c0_i32 : i32, i32
  }
}

</mosaic_0001>

<bundles_post_ra>
// kernel: classifier_forward.1
= control target key start
LH: loop header
LB: loop body
LE: loop exit
PB: predicated region body
PF: predicated region fallthrough
CT: control target
= control target key end

     0   :  { %v4341_v1 = vmov 0.0   ;;  %vm4342_vm0 = vmmov 0   ;;  %vm136_vm1 = vcmask 687104   ;;  %vm158_vm2 = vcmask 1041408   ;;  %s5335_s2 = inlined_call_operand.vmem [shape: bf16[84,104], index: 2, kind: input, shape index: {}]   ;;  %s5336_s1 = inlined_call_operand.vmem [shape: bf16[96,84], index: 1, kind: input, shape index: {}]   ;;  %s5337_s0 = inlined_call_operand.vmem [shape: bf16[112,84], index: 0, kind: input, shape index: {}]   ;;  %s5338_s4 = inlined_call_operand.vmem [shape: bf16[3,104,384], index: 4, kind: input, shape index: {}]   ;;  %s5339_s3 = inlined_call_operand.vmem [shape: f32[1,104], index: 3, kind: input, shape index: {}]   ;;  %s5340_s6 = inlined_call_operand.vmem [shape: bf16[6,384,128], index: 6, kind: input, shape index: {}]   ;;  %s5341_s5 = inlined_call_operand.vmem [shape: f32[1,384], index: 5, kind: input, shape index: {}]   ;;  %s5342_s8 = inlined_call_operand.vmem [shape: bf16[128,128], index: 8, kind: input, shape index: {}]   ;;  %s5343_s7 = inlined_call_operand.vmem [shape: f32[1,128], index: 7, kind: input, shape index: {}]   ;;  %s5344_s9 = inlined_call_operand.vmem [shape: f32[1,128], index: 9, kind: input, shape index: {}]   ;;  %s5345_s10 = inlined_call_operand.vmem [shape: f32[16,128], index: 10, kind: output, shape index: {}]  }
   0x1   :  { %v4105_v0 = vld [vmem:[%s5335_s2] sm:$0xff]   ;;  %3780 = vmatprep.subr.bf16.mxu0 %v4341_v1  ;;  %3792 = vmatprep.mubr.msk.bf16.mxu0 %vm4342_vm0, %v4341_v1  ;;  %v4106_v2 = vld [vmem:[%s5335_s2 + $0x8] sm:$0xff]   ;;  %v4107_v3 = vld [vmem:[%s5335_s2 + $0x10] sm:$0xff]   ;;  %vm607_vm3 = vcmask 1043456   ;;  %v4343_v46 = vmov 0   ;;  %vm588_vm4 = vcmask 850944  }
   0x2   :  { %3820 = vmatprep.subr.bf16.mxu1 %v4105_v0  ;;  %3781 = vmatpush3.bf16.msra.mxu0 %v4105_v0  ;;  %v4111_v4 = vld [vmem:[%s5336_s1] sm:$0xff]   ;;  %v4108_v5 = vld [vmem:[%s5335_s2 + $0x18] sm:$0xff]   ;;  %v4110_v7 = vld [vmem:[%s5335_s2 + $0x28] ss:$0 sps:$4 sm:$0x33]  }
   0x3   :  { %3821 = vmatpush3.bf16.msra.mxu1 %v4105_v0  ;;  %3782 = vmatprep.subr.bf16.mxu0 %v4341_v1  ;;  %v4109_v6 = vld [vmem:[%s5335_s2 + $0x20] sm:$0xff]   ;;  %v160_v8 = vsel %vm158_vm2, %v4110_v7, 0  ;;  %v4112_v10 = vld [vmem:[%s5336_s1 + $0x8] sm:$0xff]   ;;  %v4114_v13 = vld [vmem:[%s5336_s1 + $0x10] sm:$0xff]  }
   0x4   :  { %3822 = vmatprep.subr.bf16.mxu1 %v4106_v2  ;;  %3832 = vmatprep.mubr.msk.bf16.mxu1 %vm136_vm1, %v4111_v4  ;;  %v4126_v9 = vld [vmem:[%s5338_s4 + $0xa0] ss:$12 sps:$4 sm:$0xff]   ;;  %v4127_v11 = vld [vmem:[%s5338_s4 + $0xa4] ss:$12 sps:$4 sm:$0xff]   ;;  %v4124_v14 = vld [vmem:[%s5338_s4 + $0x9c] ss:$12 sps:$4 sm:$0xff]  }
   0x5   :  { %v4113_v12 = vld [vmem:[%s5337_s0] sm:$0xff]   ;;  %v4131_v16 = vld [vmem:[%s5338_s4 + $0xbc] ss:$12 sps:$4 sm:$0xff]   ;;  %v4132_v22 = vld [vmem:[%s5338_s4 + $0xcc] ss:$12 sps:$4 sm:$0xff]  }
   0x6   :  { %3783 = vmatpush3.bf16.msra.mxu0 %v4106_v2  ;;  %v4130_v15 = vld [vmem:[%s5338_s4 + $0xb8] ss:$12 sps:$4 sm:$0xff]   ;;  %v4116_v17 = vld [vmem:[%s5337_s0 + $0x8] sm:$0xff]   ;;  %v4128_v18 = vld [vmem:[%s5338_s4 + $0xb4] ss:$12 sps:$4 sm:$0xff]  }
   0x7   :  { %3823 = vmatpush3.bf16.msra.mxu1 %v4106_v2  ;;  %3784 = vmatprep.subr.bf16.mxu0 %v4341_v1  ;;  %v4115_v19 = vld [vmem:[%s5336_s1 + $0x18] sm:$0xff]   ;;  %v4117_v21 = vld [vmem:[%s5336_s1 + $0x20] sm:$0xff]   ;;  %v4138_v24 = vld [vmem:[%s5338_s4 + $0xe8] ss:$12 sps:$4 sm:$0xff]  }
   0x8   :  { %3824 = vmatprep.subr.bf16.mxu1 %v4107_v3  ;;  %v4134_v20 = vld [vmem:[%s5338_s4 + $0xd0] ss:$12 sps:$4 sm:$0xff]   ;;  %v4135_v23 = vld [vmem:[%s5338_s4 + $0xd4] ss:$12 sps:$4 sm:$0xff]   ;;  %v4139_v25 = vld [vmem:[%s5338_s4 + $0xec] ss:$12 sps:$4 sm:$0xff]  }
   0x9   :  { %v4136_v26 = vld [vmem:[%s5338_s4 + $0xe4] ss:$12 sps:$4 sm:$0xff]   ;;  %v4142_v27 = vld [vmem:[%s5338_s4 + $0x100] ss:$12 sps:$4 sm:$0xff]   ;;  %v4140_v31 = vld [vmem:[%s5338_s4 + $0xfc] ss:$12 sps:$4 sm:$0xff]  }
   0xa   :  { %3785 = vmatpush3.bf16.msra.mxu0 %v4107_v3  ;;  %v4119_v28 = vld [vmem:[%s5337_s0 + $0x10] sm:$0xff]   ;;  %v4118_v30 = vld [vmem:[%s5336_s1 + $0x28] sm:$0xff]   ;;  %v4120_v32 = vld [vmem:[%s5337_s0 + $0x18] sm:$0xff]  }
   0xb   :  { %3825 = vmatpush3.bf16.msra.mxu1 %v4107_v3  ;;  %3786 = vmatprep.subr.bf16.mxu0 %v4341_v1  ;;  %v4143_v29 = vld [vmem:[%s5338_s4 + $0x104] ss:$12 sps:$4 sm:$0xff]   ;;  %v4122_v34 = vld [vmem:[%s5337_s0 + $0x28] sm:$0xff]   ;;  %v4144_v38 = vld [vmem:[%s5338_s4 + $0x114] ss:$12 sps:$4 sm:$0xff]  }
   0xc   :  { %3826 = vmatprep.subr.bf16.mxu1 %v4108_v5  ;;  %v4121_v33 = vld [vmem:[%s5337_s0 + $0x20] sm:$0xff]   ;;  %v4123_v35 = vld [vmem:[%s5337_s0 + $0x30] sm:$0xff]   ;;  %v4147_v37 = vld [vmem:[%s5338_s4 + $0x11c] ss:$12 sps:$4 sm:$0xff]  }
   0xd   :  { %v4146_v36 = vld [vmem:[%s5338_s4 + $0x118] ss:$12 sps:$4 sm:$0xff]   ;;  %v3100_v39 = vld [vmem:[%s5338_s4 + $0x12c] sm:$0xff]  ;;  %v4150_v42 = vld [vmem:[%s5338_s4 + $0x134] ss:$0 sps:$4 sm:$0xff]  }
   0xe   :  { %3787 = vmatpush3.bf16.msra.mxu0 %v4108_v5  ;;  %v3121_v40 = vcombine.high %v3100_v39, %v3100_v39  ;;  %v3120_v41 = vcombine.low %v3100_v39, %v3100_v39  ;;  %v615_v44 = vsel %vm607_vm3, %v4150_v42, 0  ;;  %v4153_v45 = vld [vmem:[%s5338_s4 + $0x4] ss:$12 sps:$4 sm:$0xff]   ;;  %v4154_v47 = vld [vmem:[%s5338_s4 + $0x8] ss:$12 sps:$4 sm:$0xff]  }
   0xf   :  { %3827 = vmatpush3.bf16.msra.mxu1 %v4108_v5  ;;  %3788 = vmatprep.subr.bf16.mxu0 %v4341_v1  ;;  %v4563_v48 = vld [vmem:[%s5339_s3] ss:$0 sm:$0xff] }
  0x10   :  { %3828 = vmatprep.subr.bf16.mxu1 %v4109_v6  ;;  %v609_v43 = vsel %vm607_vm3, %v3120_v41, 0 }
  0x12   :  { %3789 = vmatpush3.bf16.msra.mxu0 %v4109_v6 }
  0x13   :  { %3829 = vmatpush3.bf16.msra.mxu1 %v4109_v6  ;;  %3790 = vmatprep.subr.bf16.mxu0 %v4341_v1 }
  0x14   :  { %4098 = vmatprep.subr.msk.bf16.mxu1 %vm158_vm2, %v4110_v7 }
  0x16   :  { %3791 = vmatpush3.bf16.msra.mxu0 %v160_v8 }
  0x17   :  { %3831 = vmatpush3.bf16.msra.mxu1 %v160_v8  ;;  %3844 = vmatprep.subr.bf16.mxu0 %v4127_v11  ;;  %v4151_v8 = vld [vmem:[%s5338_s4] ss:$12 sps:$4 sm:$0xff]  }
  0x18   :  { %617 = vmatprep.subr.bf16.mxu1 %v4126_v9 }
  0x19   :  { %3793 = vmatmul.mubr.msk.bf16.vlgmr.msra.gmra.mrb[0].mxu0 %vm136_vm1, %v4113_v12  ;;  %v4158_v12 = vld [vmem:[%s5338_s4 + $0x1c] ss:$12 sps:$4 sm:$0xff]  }
  0x1a   :  { %3833 = vmatmul.mubr.msk.bf16.vlgmr.msra.gmra.mrb[0].mxu1 %vm136_vm1, %v4112_v10  ;;  %3796 = vmatprep.mubr.msk.bf16.mxu0 %vm4342_vm0, %v4341_v1 }
  0x1b   :  { %3836 = vmatprep.mubr.msk.bf16.mxu1 %vm136_vm1, %v4114_v13  ;;  %618 = vmatpush1.bf16.msra.mxu1 %v4124_v14 }
  0x1c   :  { %3845 = vmatpush3.bf16.msra.mxu0 %v4127_v11  ;;  %619 = vmatprep.subr.bf16.mxu1 %v4130_v15 }
  0x1d   :  { %3846 = vmatprep.subr.bf16.mxu0 %v4131_v16 }
  0x1f   :  { %620 = vmatpush1.bf16.msra.mxu1 %v4128_v18 }
  0x20   :  { %3847 = vmatpush3.bf16.msra.mxu0 %v4131_v16  ;;  %621 = vmatprep.subr.bf16.mxu1 %v4134_v20 }
  0x21   :  { %3797 = vmatmul.mubr.msk.bf16.gmra.mrb[4].mxu0 %vm136_vm1, %v4116_v17  ;;  %3848 = vmatprep.subr.bf16.mxu0 %v4135_v23  ;;  %v4155_v17 = vld [vmem:[%s5338_s4 + $0x20] ss:$12 sps:$4 sm:$0xff]  }
  0x22   :  { %3837 = vmatmul.mubr.msk.bf16.gmra.mrb[4].mxu1 %vm136_vm1, %v4115_v19  ;;  %3800 = vmatprep.mubr.msk.bf16.mxu0 %vm4342_vm0, %v4341_v1 }
  0x23   :  { %3840 = vmatprep.mubr.msk.bf16.mxu1 %vm136_vm1, %v4117_v21  ;;  %622 = vmatpush1.bf16.msra.mxu1 %v4132_v22 }
  0x24   :  { %3849 = vmatpush3.bf16.msra.mxu0 %v4135_v23  ;;  %623 = vmatprep.subr.bf16.mxu1 %v4138_v24 }
  0x25   :  { %3850 = vmatprep.subr.bf16.mxu0 %v4139_v25 }
  0x27   :  { %624 = vmatpush1.bf16.msra.mxu1 %v4136_v26 }
  0x28   :  { %3851 = vmatpush3.bf16.msra.mxu0 %v4139_v25  ;;  %625 = vmatprep.subr.bf16.mxu1 %v4142_v27  ;;  %v4156_v27 = vld [vmem:[%s5338_s4 + $0x18] ss:$12 sps:$4 sm:$0xff]  }
  0x29   :  { %3801 = vmatmul.mubr.msk.bf16.gmra.mrb[8].mxu0 %vm136_vm1, %v4119_v28  ;;  %3852 = vmatprep.subr.bf16.mxu0 %v4143_v29 }
  0x2a   :  { %3841 = vmatmul.mubr.msk.bf16.gmra.mrb[8].mxu1 %vm136_vm1, %v4118_v30  ;;  %3804 = vmatprep.mubr.msk.bf16.mxu0 %vm4342_vm0, %v4341_v1  ;;  %v4163_v30 = vld [vmem:[%s5338_s4 + $0x34] ss:$12 sps:$4 sm:$0xff]  }
  0x2b   :  { %626 = vmatpush1.bf16.msra.mxu1 %v4140_v31  ;;  %649 = vmatprep.mubr.bf16.mxu1 %v4343_v46 }
  0x2c   :  { %3853 = vmatpush3.bf16.msra.mxu0 %v4143_v29  ;;  %627 = vmatprep.subr.bf16.mxu1 %v4146_v36 }
  0x2d   :  { %3854 = vmatprep.subr.bf16.mxu0 %v4147_v37 }
  0x2f   :  { %628 = vmatpush1.bf16.msra.mxu1 %v4144_v38 }
  0x30   :  { %3855 = vmatpush3.bf16.msra.mxu0 %v4147_v37  ;;  %3123 = vmatprep.subr.msk.bf16.mxu1 %vm607_vm3, %v3121_v40  ;;  %v4161_v37 = vld [vmem:[%s5338_s4 + $0x30] ss:$12 sps:$4 sm:$0xff]  }
  0x31   :  { %3805 = vmatmul.mubr.msk.bf16.gmra.mrb[12].mxu0 %vm136_vm1, %v4120_v32  ;;  %4099 = vmatprep.subr.msk.bf16.mxu0 %vm607_vm3, %v4150_v42 }
  0x32   :  { %3808 = vmatprep.mubr.msk.bf16.mxu0 %vm4342_vm0, %v4341_v1 }
  0x33   :  { %630 = vmatpush1.bf16.msra.mxu1 %v609_v43 }
  0x34   :  { %3857 = vmatpush3.bf16.msra.mxu0 %v615_v44  ;;  %916 = vmatprep.subr.bf16.mxu1 %v4153_v45  ;;  %v4160_v45 = vld [vmem:[%s5338_s4 + $0x50] ss:$12 sps:$4 sm:$0xff]  }
  0x35   :  { %3870 = vmatprep.subr.bf16.mxu0 %v4154_v47 }
  0x39   :  { %3809 = vmatmul.mubr.msk.bf16.gmra.mrb[16].mxu0 %vm136_vm1, %v4121_v33  ;;  %v4159_v33 = vld [vmem:[%s5338_s4 + $0x38] ss:$12 sps:$4 sm:$0xff]  }
  0x3a   :  { %3812 = vmatprep.mubr.msk.bf16.mxu0 %vm4342_vm0, %v4341_v1 }
  0x41   :  { %3813 = vmatmul.mubr.msk.bf16.gmra.mrb[20].mxu0 %vm136_vm1, %v4122_v34 }
  0x42   :  { %3816 = vmatprep.mubr.msk.bf16.mxu0 %vm4342_vm0, %v4341_v1 }
  0x49   :  { %3817 = vmatmul.mubr.msk.bf16.gmra.mrb[24].mxu0 %vm136_vm1, %v4123_v35 }
  0xec   :  { %v196_v49 = vpop.f32.mrb[0].mxu0 }
  0xed   :  { %v3834_v50 = vpop.f32.mrb[0].mxu1  ;;  %v197_v51 = vadd.f32 %v4563_v48, %v196_v49  ;;  %v3794_v52 = vpop.f32.mrb[1].mxu0 }
  0xee   :  { %v375_v53 = vadd.f32 %v3834_v50, %v4563_v48  ;;  %v366_v54 = vpop.f32.mrb[1].mxu1  ;;  %v199_v55 = vpop.f32.mrb[2].mxu0 }
  0xef   :  { %v367_v56 = vadd.f32 %v4563_v48, %v366_v54  ;;  %v3835_v57 = vpop.f32.mrb[2].mxu1  ;;  %v251_v58 = vmax.f32 %v197_v51, 0.0  ;;  %v200_v59 = vadd.f32 %v4563_v48, %v199_v55  ;;  %v3795_v60 = vpop.f32.mrb[3].mxu0 }
  0xf0   :  { %v378_v61 = vadd.f32 %v3835_v57, %v4563_v48  ;;  %v369_v62 = vpop.f32.mrb[3].mxu1  ;;  %v415_v2 = vmax.f32 %v375_v53, 0.0 }
  0xf1   :  { %v370_v63 = vadd.f32 %v4563_v48, %v369_v62  ;;  %v252_v0 = vmax.f32 %v200_v59, 0.0  ;;  %v413_v4 = vmax.f32 %v367_v56, 0.0  ;;  %v4172_v62 = vld [vmem:[%s5338_s4 + $0x64] ss:$12 sps:$4 sm:$0xff]  }
  0xf2   :  { %v416_v3 = vmax.f32 %v378_v61, 0.0 }
  0xf3   :  { %v414_v5 = vmax.f32 %v370_v63, 0.0  ;;  %v4571_v6 = vpack.c.bf16 %v252_v0, %v251_v58  ;;  %v4165_v58 = vld [vmem:[%s5338_s4 + $0x48] ss:$12 sps:$4 sm:$0xff]  }
  0xf4   :  { %v426_v7 = vpack.c.bf16 %v416_v3, %v415_v2  ;;  %v204_v9 = vpop.f32.mrb[4].mxu0  ;;  %v4164_v0 = vld [vmem:[%s5338_s4 + $0x68] ss:$12 sps:$4 sm:$0xff]  }
  0xf5   :  { %v425_v10 = vpack.c.bf16 %v414_v5, %v413_v4  ;;  %v3838_v11 = vpop.f32.mrb[4].mxu1  ;;  %v205_v13 = vadd.f32 %v4563_v48, %v204_v9  ;;  %v3798_v14 = vpop.f32.mrb[5].mxu0 }
  0xf6   :  { %v391_v15 = vadd.f32 %v3838_v11, %v4563_v48  ;;  %v382_v16 = vpop.f32.mrb[5].mxu1  ;;  %v207_v18 = vpop.f32.mrb[6].mxu0  ;;  %v4170_v11 = vld [vmem:[%s5338_s4 + $0x60] ss:$12 sps:$4 sm:$0xff]  }
  0xf7   :  { %3124 = vmatmul.mubr.msk.bf16.vlgmr.msra.gmra.mrb[12].mxu1 %vm588_vm4, %v425_v10  ;;  %3858 = vmatprep.mubr.msk.bf16.mxu0 %vm588_vm4, %v425_v10  ;;  %v383_v19 = vadd.f32 %v4563_v48, %v382_v16  ;;  %v3839_v20 = vpop.f32.mrb[6].mxu1  ;;  %v253_v21 = vmax.f32 %v205_v13, 0.0  ;;  %v208_v22 = vadd.f32 %v4563_v48, %v207_v18  ;;  %v3799_v23 = vpop.f32.mrb[7].mxu0  ;;  %v4168_v10 = vld [vmem:[%s5338_s4 + $0x80] ss:$12 sps:$4 sm:$0xff]  }
  0xf8   :  { %917 = vmatpush1.bf16.msra.mxu1 %v4151_v8  ;;  %v419_v24 = vmax.f32 %v391_v15, 0.0  ;;  %3859 = vmatmul.mubr.msk.bf16.vlgmr.msra.gmra.mrb[28].mxu0 %vm588_vm4, %v426_v7  ;;  %v394_v25 = vadd.f32 %v3839_v20, %v4563_v48  ;;  %v385_v26 = vpop.f32.mrb[7].mxu1  ;;  %v4177_v16 = vld [vmem:[%s5338_s4 + $0x7c] ss:$12 sps:$4 sm:$0xff]   ;;  %v4175_v20 = vld [vmem:[%s5338_s4 + $0x78] ss:$12 sps:$4 sm:$0xff]  }
  0xf9   :  { %3871 = vmatpush3.bf16.msra.mxu0 %v4154_v47  ;;  %v417_v28 = vmax.f32 %v383_v19, 0.0  ;;  %v386_v29 = vadd.f32 %v4563_v48, %v385_v26  ;;  %918 = vmatprep.subr.bf16.mxu1 %v4158_v12  ;;  %v254_v31 = vmax.f32 %v208_v22, 0.0  ;;  %v4167_v47 = vld [vmem:[%s5338_s4 + $0x4c] ss:$12 sps:$4 sm:$0xff]  }
  0xfa   :  { %v420_v32 = vmax.f32 %v394_v25, 0.0  ;;  %3872 = vmatprep.subr.bf16.mxu0 %v4155_v17  ;;  %659 = vmatprep.mubr.bf16.mxu1 %v4343_v46  ;;  %v4169_v19 = vld [vmem:[%s5338_s4 + $0x98] ss:$0 sps:$4 sm:$0xff]  }
  0xfb   :  { %v418_v34 = vmax.f32 %v386_v29, 0.0  ;;  %v4601_v35 = vpack.c.bf16 %v254_v31, %v253_v21 }
  0xfc   :  { %v4603_v36 = vpack.c.bf16 %v420_v32, %v419_v24  ;;  %919 = vmatpush1.bf16.msra.mxu1 %v4156_v27  ;;  %v212_v38 = vpop.f32.mrb[8].mxu0  ;;  %v914_v27 = vsel %vm607_vm3, %v4169_v19, 0 }
  0xfd   :  { %v427_v39 = vpack.c.bf16 %v418_v34, %v417_v28  ;;  %3873 = vmatpush3.bf16.msra.mxu0 %v4155_v17  ;;  %v3842_v40 = vpop.f32.mrb[8].mxu1  ;;  %920 = vmatprep.subr.bf16.mxu1 %v4163_v30  ;;  %v213_v41 = vadd.f32 %v4563_v48, %v212_v38  ;;  %v3802_v42 = vpop.f32.mrb[9].mxu0  ;;  %v455_v17 = vld [vmem:[%s5338_s4 + $0x90] sm:$0xff]  ;;  %v4173_v28 = vld [vmem:[%s5338_s4 + $0x140] ss:$12 sps:$4 sm:$0xff]  }
  0xfe   :  { %3874 = vmatprep.subr.bf16.mxu0 %v4159_v33  ;;  %v407_v43 = vadd.f32 %v3842_v40, %v4563_v48  ;;  %v398_v44 = vpop.f32.mrb[9].mxu1  ;;  %v215_v49 = vpop.f32.mrb[10].mxu0  ;;  %v3155_v22 = vcombine.high %v455_v17, %v455_v17  ;;  %v3154_v23 = vcombine.low %v455_v17, %v455_v17  ;;  %v4185_v34 = vld [vmem:[%s5338_s4 + $0x13c] ss:$12 sps:$4 sm:$0xff]   ;;  %v4205_v17 = vld [vmem:[%s5340_s6 + $0x140] sm:$0xff]  }
  0xff   :  { %3125 = vmatmul.mubr.msk.bf16.gmra.mrb[16].mxu1 %vm588_vm4, %v426_v7  ;;  %v399_v50 = vadd.f32 %v4563_v48, %v398_v44  ;;  %v3843_v51 = vpop.f32.mrb[10].mxu1  ;;  %3862 = vmatprep.mubr.msk.bf16.mxu0 %vm588_vm4, %v427_v39  ;;  %v255_v52 = vmax.f32 %v213_v41, 0.0  ;;  %v216_v53 = vadd.f32 %v4563_v48, %v215_v49  ;;  %v3803_v54 = vpop.f32.mrb[11].mxu0  ;;  %v4178_v42 = vld [vmem:[%s5338_s4 + $0x170] ss:$12 sps:$4 sm:$0xff]  }
 0x100   :  { %v423_v55 = vmax.f32 %v407_v43, 0.0  ;;  %v410_v56 = vadd.f32 %v3843_v51, %v4563_v48  ;;  %v401_v57 = vpop.f32.mrb[11].mxu1  ;;  %3863 = vmatmul.mubr.msk.bf16.gmra.mrb[32].mxu0 %vm588_vm4, %v4603_v36  ;;  %921 = vmatpush1.bf16.msra.mxu1 %v4161_v37 }
 0x101   :  { %3875 = vmatpush3.bf16.msra.mxu0 %v4159_v33  ;;  %v421_v59 = vmax.f32 %v399_v50, 0.0  ;;  %v402_v60 = vadd.f32 %v4563_v48, %v401_v57  ;;  %669 = vmatprep.mubr.bf16.mxu1 %v4343_v46  ;;  %v256_v61 = vmax.f32 %v216_v53, 0.0  ;;  %v908_v33 = vsel %vm607_vm3, %v3154_v23, 0  ;;  %v4179_v50 = vld [vmem:[%s5338_s4 + $0x188] ss:$12 sps:$4 sm:$0xff]   ;;  %v4219_v23 = vld [vmem:[%s5340_s6 + $0xc0] sm:$0xff]  }
 0x102   :  { %v424_v63 = vmax.f32 %v410_v56, 0.0  ;;  %3876 = vmatprep.subr.bf16.mxu0 %v4160_v45  ;;  %922 = vmatprep.subr.bf16.mxu1 %v4167_v47 }
 0x103   :  { %v422_v2 = vmax.f32 %v402_v60, 0.0  ;;  %v4634_v3 = vpack.c.bf16 %v256_v61, %v255_v52  ;;  %v4186_v61 = vld [vmem:[%s5338_s4 + $0x1b8] ss:$12 sps:$4 sm:$0xff]  }
 0x104   :  { %v4636_v4 = vpack.c.bf16 %v424_v63, %v423_v55  ;;  %923 = vmatpush1.bf16.msra.mxu1 %v4165_v58  ;;  %v220_v5 = vpop.f32.mrb[12].mxu0  ;;  %v4182_v55 = vld [vmem:[%s5338_s4 + $0x1a0] ss:$12 sps:$4 sm:$0xff]   ;;  %v4183_v63 = vld [vmem:[%s5338_s4 + $0x138] ss:$12 sps:$4 sm:$0xff]  }
 0x105   :  { %v429_v7 = vpack.c.bf16 %v422_v2, %v421_v59  ;;  %3877 = vmatpush3.bf16.msra.mxu0 %v4160_v45  ;;  %v221_v8 = vadd.f32 %v4563_v48, %v220_v5  ;;  %924 = vmatprep.subr.bf16.mxu1 %v4172_v62  ;;  %v3806_v9 = vpop.f32.mrb[13].mxu0  ;;  %v4188_v2 = vld [vmem:[%s5338_s4 + $0x150] ss:$12 sps:$4 sm:$0xff]  }
 0x106   :  { %3878 = vmatprep.subr.bf16.mxu0 %v4164_v0  ;;  %v223_v12 = vpop.f32.mrb[14].mxu0  ;;  %v4199_v9 = vld [vmem:[%s5338_s4 + $0x19c] ss:$12 sps:$4 sm:$0xff]  }
 0x107   :  { %3126 = vmatmul.mubr.msk.bf16.gmra.mrb[20].mxu1 %vm588_vm4, %v427_v39  ;;  %3866 = vmatprep.mubr.msk.bf16.mxu0 %vm588_vm4, %v429_v7  ;;  %v257_v13 = vmax.f32 %v221_v8, 0.0  ;;  %v224_v14 = vadd.f32 %v4563_v48, %v223_v12  ;;  %v3807_v15 = vpop.f32.mrb[15].mxu0  ;;  %v4194_v8 = vld [vmem:[%s5338_s4 + $0x180] ss:$12 sps:$4 sm:$0xff]  }
 0x108   :  { %3867 = vmatmul.mubr.msk.bf16.gmra.mrb[36].mxu0 %vm588_vm4, %v4636_v4  ;;  %679 = vmatprep.mubr.bf16.mxu1 %v4343_v46  ;;  %v3194_v12 = vld [vmem:[%s5338_s4 + $0x1c8] sm:$0xff] }
 0x109   :  { %3879 = vmatpush3.bf16.msra.mxu0 %v4164_v0  ;;  %3884 = vmatprep.mubr.msk.bf16.mxu0 %vm588_vm4, %v4571_v6  ;;  %v258_v18 = vmax.f32 %v224_v14, 0.0  ;;  %v4187_v0 = vld [vmem:[%s5338_s4 + $0x1d0] ss:$0 sps:$4 sm:$0xff]   ;;  %v3215_v14 = vcombine.high %v3194_v12, %v3194_v12  ;;  %v3214_v15 = vcombine.low %v3194_v12, %v3194_v12 }
 0x10a   :  { %3880 = vmatprep.subr.bf16.mxu0 %v4168_v10  ;;  %925 = vmatpush1.bf16.msra.mxu1 %v4170_v11  ;;  %v1225_v5 = vsel %vm607_vm3, %v4187_v0, 0  ;;  %v4202_v11 = vld [vmem:[%s5338_s4 + $0x1b4] ss:$12 sps:$4 sm:$0xff]  }
 0x10b   :  { %v4665_v21 = vpack.c.bf16 %v258_v18, %v257_v13  ;;  %926 = vmatprep.subr.bf16.mxu1 %v4177_v16  ;;  %v4200_v13 = vld [vmem:[%s5338_s4 + $0x1b0] ss:$12 sps:$4 sm:$0xff]   ;;  %v1219_v16 = vsel %vm607_vm3, %v3214_v15, 0  ;;  %v4206_v18 = vld [vmem:[%s5340_s6 + $0x148] sm:$0xff]  }
 0x10c   :  { %v228_v24 = vpop.f32.mrb[16].mxu0 }
 0x10d   :  { %3881 = vmatpush3.bf16.msra.mxu0 %v4168_v10  ;;  %v229_v25 = vadd.f32 %v4563_v48, %v228_v24  ;;  %v3810_v26 = vpop.f32.mrb[17].mxu0  ;;  %v4197_v10 = vld [vmem:[%s5338_s4 + $0x198] ss:$12 sps:$4 sm:$0xff]   ;;  %v4221_v24 = vld [vmem:[%s5340_s6 + $0x108] sm:$0xff]  }
 0x10e   :  { %4100 = vmatprep.subr.msk.bf16.mxu0 %vm607_vm3, %v4169_v19  ;;  %v231_v29 = vpop.f32.mrb[18].mxu0  ;;  %927 = vmatpush1.bf16.msra.mxu1 %v4175_v20  ;;  %v4209_v19 = vld [vmem:[%s5340_s6 + $0x160] sm:$0xff]   ;;  %v4210_v20 = vld [vmem:[%s5340_s6 + $0x168] sm:$0xff]   ;;  %v4224_v26 = vld [vmem:[%s5340_s6 + $0x110] sm:$0xff]  }
 0x10f   :  { %3127 = vmatmul.mubr.msk.bf16.gmra.mrb[24].mxu1 %vm588_vm4, %v4603_v36  ;;  %v259_v30 = vmax.f32 %v229_v25, 0.0  ;;  %v232_v31 = vadd.f32 %v4563_v48, %v231_v29  ;;  %v3811_v32 = vpop.f32.mrb[19].mxu0  ;;  %3157 = vmatprep.subr.msk.bf16.mxu1 %vm607_vm3, %v3155_v22  ;;  %v4174_v36 = vld [vmem:[%s5338_s4 + $0x158] ss:$12 sps:$4 sm:$0xff]   ;;  %v4222_v25 = vld [vmem:[%s5340_s6 + $0xc8] sm:$0xff]  }
 0x110   :  { %689 = vmatprep.mubr.bf16.mxu1 %v4343_v46  ;;  %v4218_v22 = vld [vmem:[%s5340_s6 + $0x100] sm:$0xff]   ;;  %v4228_v29 = vld [vmem:[%s5340_s6 + $0xd8] sm:$0xff]   ;;  %v4233_v32 = vld [vmem:[%s5340_s6 + $0x128] sm:$0xff]  }
 0x111   :  { %3883 = vmatpush3.bf16.msra.mxu0 %v914_v27  ;;  %v260_v37 = vmax.f32 %v232_v31, 0.0  ;;  %v4225_v27 = vld [vmem:[%s5340_s6 + $0xd0] sm:$0xff]   ;;  %v4231_v31 = vld [vmem:[%s5340_s6 + $0xe0] sm:$0xff]  }
 0x112   :  { %3896 = vmatprep.subr.bf16.mxu0 %v4173_v28  ;;  %929 = vmatpush1.bf16.msra.mxu1 %v908_v33  ;;  %v4234_v33 = vld [vmem:[%s5340_s6 + $0xe8] sm:$0xff]  }
 0x113   :  { %v4685_v38 = vpack.c.bf16 %v260_v37, %v259_v30  ;;  %1227 = vmatprep.subr.bf16.mxu1 %v4185_v34  ;;  %v4230_v30 = vld [vmem:[%s5340_s6 + $0x120] sm:$0xff]   ;;  %v4236_v34 = vld [vmem:[%s5340_s6 + $0x130] sm:$0xff]  }
 0x114   :  { %3885 = vmatmul.mubr.msk.bf16.vlgmr.msra.gmra.mrb[28].mxu0 %vm588_vm4, %v4601_v35  ;;  %v236_v39 = vpop.f32.mrb[20].mxu0  ;;  %v4237_v37 = vld [vmem:[%s5340_s6 + $0xf0] sm:$0xff]  }
 0x115   :  { %3897 = vmatpush3.bf16.msra.mxu0 %v4173_v28  ;;  %v237_v40 = vadd.f32 %v4563_v48, %v236_v39  ;;  %3888 = vmatprep.mubr.msk.bf16.mxu0 %vm588_vm4, %v4634_v3  ;;  %v3814_v41 = vpop.f32.mrb[21].mxu0  ;;  %v4227_v28 = vld [vmem:[%s5340_s6 + $0x118] sm:$0xff]   ;;  %v4242_v39 = vld [vmem:[%s5340_s6 + $0x40] sm:$0xff]  }
 0x116   :  { %3898 = vmatprep.subr.bf16.mxu0 %v4174_v36  ;;  %v239_v43 = vpop.f32.mrb[22].mxu0 }
 0x117   :  { %3128 = vmatmul.mubr.msk.bf16.gmra.mrb[28].mxu1 %vm588_vm4, %v429_v7  ;;  %v261_v44 = vmax.f32 %v237_v40, 0.0  ;;  %v240_v45 = vadd.f32 %v4563_v48, %v239_v43  ;;  %v3815_v47 = vpop.f32.mrb[23].mxu0  ;;  %v4196_v7 = vld [vmem:[%s5338_s4 + $0x184] ss:$12 sps:$4 sm:$0xff]  }
 0x118   :  { %699 = vmatprep.mubr.bf16.mxu1 %v4343_v46 }
 0x119   :  { %3899 = vmatpush3.bf16.msra.mxu0 %v4174_v36  ;;  %v262_v49 = vmax.f32 %v240_v45, 0.0  ;;  %v4239_v36 = vld [vmem:[%s5340_s6 + $0x138] sm:$0xff]  }
 0x11a   :  { %3900 = vmatprep.subr.bf16.mxu0 %v4178_v42 }
 0x11b   :  { %v4701_v51 = vpack.c.bf16 %v262_v49, %v261_v44  ;;  %v1427_v49 = vlaneseq }
 0x11c   :  { %3889 = vmatmul.mubr.msk.bf16.gmra.mrb[32].mxu0 %vm588_vm4, %v4665_v21  ;;  %v244_v52 = vpop.f32.mrb[24].mxu0 }
 0x11d   :  { %3901 = vmatpush3.bf16.msra.mxu0 %v4178_v42  ;;  %3892 = vmatprep.mubr.msk.bf16.mxu0 %vm588_vm4, %v4685_v38  ;;  %v245_v53 = vadd.f32 %v4563_v48, %v244_v52  ;;  %v3818_v54 = vpop.f32.mrb[25].mxu0 }
 0x11e   :  { %3902 = vmatprep.subr.bf16.mxu0 %v4179_v50  ;;  %v247_v56 = vpop.f32.mrb[26].mxu0 }
 0x11f   :  { %3129 = vmatmul.mubr.msk.bf16.gmra.mrb[32].mxu1 %vm588_vm4, %v4636_v4  ;;  %v263_v57 = vmax.f32 %v245_v53, 0.0  ;;  %v248_v58 = vadd.f32 %v4563_v48, %v247_v56  ;;  %v3819_v59 = vpop.f32.mrb[27].mxu0  ;;  %v4190_v48 = vld [vmem:[%s5338_s4 + $0x154] ss:$12 sps:$4 sm:$0xff]   ;;  %v4193_v4 = vld [vmem:[%s5338_s4 + $0x16c] ss:$12 sps:$4 sm:$0xff]  }
 0x120   :  { %948 = vmatprep.mubr.bf16.mxu1 %v4343_v46  ;;  %v4898_v53 = vshrl.u32 %v1427_v49, 7  ;;  %v4904_v59 = vld [vmem:[%s5341_s5] sm:$0x7] }
 0x121   :  { %3903 = vmatpush3.bf16.msra.mxu0 %v4179_v50  ;;  %v264_v60 = vmax.f32 %v248_v58, 0.0 }
 0x122   :  { %3904 = vmatprep.subr.bf16.mxu0 %v4182_v55  ;;  %v1437_v58 = vsub.s32 2, %v4898_v53 }
 0x123   :  { %v4718_v62 = vpack.c.bf16 %v264_v60, %v263_v57 }
 0x124   :  { %3893 = vmatmul.mubr.msk.bf16.gmra.mrb[40].mxu0 %vm588_vm4, %v4701_v51  ;;  %v1438_v60 = vrot.slane %v4904_v59, %v1437_v58 }
 0x125   :  { %3905 = vmatpush3.bf16.msra.mxu0 %v4182_v55  ;;  %3910 = vmatprep.mubr.msk.bf16.mxu0 %vm588_vm4, %v4601_v35 }
 0x126   :  { %3906 = vmatprep.subr.bf16.mxu0 %v4186_v61 }
 0x127   :  { %3158 = vmatmul.mubr.msk.bf16.vlgmr.msra.gmra.mrb[12].mxu1 %vm588_vm4, %v4571_v6  ;;  %v4191_v6 = vld [vmem:[%s5338_s4 + $0x168] ss:$12 sps:$4 sm:$0xff]  }
 0x128   :  { %1228 = vmatpush1.bf16.msra.mxu1 %v4183_v63  ;;  %958 = vmatprep.mubr.bf16.mxu1 %v4343_v46 }
 0x129   :  { %3907 = vmatpush3.bf16.msra.mxu0 %v4186_v61  ;;  %1229 = vmatprep.subr.bf16.mxu1 %v4190_v48 }
 0x12a   :  { %4101 = vmatprep.subr.msk.bf16.mxu0 %vm607_vm3, %v4187_v0 }
 0x12c   :  { %1230 = vmatpush1.bf16.msra.mxu1 %v4188_v2 }
 0x12d   :  { %3909 = vmatpush3.bf16.msra.mxu0 %v1225_v5  ;;  %1231 = vmatprep.subr.bf16.mxu1 %v4193_v4 }
 0x12e   :  { %3616 = vmatprep.subr.bf16.mxu0 %v4218_v22 }
 0x12f   :  { %3159 = vmatmul.mubr.msk.bf16.gmra.mrb[16].mxu1 %vm588_vm4, %v4601_v35 }
 0x130   :  { %3911 = vmatmul.mubr.msk.bf16.vlgmr.msra.gmra.mrb[28].mxu0 %vm588_vm4, %v4634_v3  ;;  %1232 = vmatpush1.bf16.msra.mxu1 %v4191_v6 }
 0x131   :  { %968 = vmatprep.mubr.bf16.mxu1 %v4343_v46  ;;  %3914 = vmatprep.mubr.msk.bf16.mxu0 %vm588_vm4, %v4665_v21 }
 0x132   :  { %1233 = vmatprep.subr.bf16.mxu1 %v4196_v7  ;;  %3617 = vmatpush3.bf16.msra.mxu0 %v4219_v23  ;;  %v4215_v23 = vld [vmem:[%s5340_s6 + $0x90] sm:$0xff]  }
 0x133   :  { %3618 = vmatprep.subr.bf16.mxu0 %v4221_v24 }
 0x134   :  { %1234 = vmatpush1.bf16.msra.mxu1 %v4194_v8 }
 0x135   :  { %1235 = vmatprep.subr.bf16.mxu1 %v4199_v9 }
 0x136   :  { %3619 = vmatpush3.bf16.msra.mxu0 %v4222_v25 }
 0x137   :  { %3160 = vmatmul.mubr.msk.bf16.gmra.mrb[20].mxu1 %vm588_vm4, %v4634_v3  ;;  %3620 = vmatprep.subr.bf16.mxu0 %v4224_v26 }
 0x138   :  { %3915 = vmatmul.mubr.msk.bf16.gmra.mrb[32].mxu0 %vm588_vm4, %v4685_v38  ;;  %978 = vmatprep.mubr.bf16.mxu1 %v4343_v46 }
 0x139   :  { %3918 = vmatprep.mubr.msk.bf16.mxu0 %vm588_vm4, %v4701_v51  ;;  %1236 = vmatpush1.bf16.msra.mxu1 %v4197_v10  ;;  %v4213_v10 = vld [vmem:[%s5340_s6 + $0x80] sm:$0xff]  }
 0x13a   :  { %1237 = vmatprep.subr.bf16.mxu1 %v4202_v11  ;;  %3621 = vmatpush3.bf16.msra.mxu0 %v4225_v27 }
 0x13b   :  { %3622 = vmatprep.subr.bf16.mxu0 %v4227_v28 }
 0x13d   :  { %1238 = vmatpush1.bf16.msra.mxu1 %v4200_v13 }
 0x13e   :  { %3217 = vmatprep.subr.msk.bf16.mxu1 %vm607_vm3, %v3215_v14  ;;  %3623 = vmatpush3.bf16.msra.mxu0 %v4228_v29 }
 0x13f   :  { %3161 = vmatmul.mubr.msk.bf16.gmra.mrb[24].mxu1 %vm588_vm4, %v4665_v21  ;;  %3624 = vmatprep.subr.bf16.mxu0 %v4230_v30  ;;  %v4216_v30 = vld [vmem:[%s5340_s6 + $0x98] sm:$0xff]  }
 0x140   :  { %3919 = vmatmul.mubr.msk.bf16.gmra.mrb[44].mxu0 %vm588_vm4, %v4718_v62  ;;  %988 = vmatprep.mubr.bf16.mxu1 %v4343_v46 }
 0x141   :  { %1240 = vmatpush1.bf16.msra.mxu1 %v1219_v16 }
 0x142   :  { %3922 = vmatprep.subr.bf16.mxu1 %v4341_v1  ;;  %3625 = vmatpush3.bf16.msra.mxu0 %v4231_v31 }
 0x143   :  { %3626 = vmatprep.subr.bf16.mxu0 %v4233_v32 }
 0x146   :  { %3627 = vmatpush3.bf16.msra.mxu0 %v4234_v33 }
 0x147   :  { %3162 = vmatmul.mubr.msk.bf16.gmra.mrb[28].mxu1 %vm588_vm4, %v4685_v38  ;;  %3628 = vmatprep.subr.bf16.mxu0 %v4236_v34 }
 0x148   :  { %998 = vmatprep.mubr.bf16.mxu1 %v4343_v46 }
 0x14a   :  { %3629 = vmatpush3.bf16.msra.mxu0 %v4237_v37  ;;  %v4217_v37 = vld [vmem:[%s5340_s6 + $0xa0] sm:$0xff]  }
 0x14b   :  { %3630 = vmatprep.subr.bf16.mxu0 %v4239_v36 }
 0x14f   :  { %3163 = vmatmul.mubr.msk.bf16.gmra.mrb[36].mxu1 %vm588_vm4, %v4701_v51 }
 0x150   :  { %1259 = vmatprep.mubr.bf16.mxu1 %v4343_v46 }
 0x157   :  { %3218 = vmatmul.mubr.msk.bf16.vlgmr.msra.gmra.mrb[12].mxu1 %vm588_vm4, %v4601_v35  ;;  %v4207_v35 = vld [vmem:[%s5340_s6 + $0x150] sm:$0xff]  }
 0x158   :  { %1269 = vmatprep.mubr.bf16.mxu1 %v4343_v46  ;;  %3923 = vmatpush3.bf16.msra.mxu1 %v4205_v17 }
 0x159   :  { %3924 = vmatprep.subr.bf16.mxu1 %v4341_v1 }
 0x15c   :  { %3925 = vmatpush3.bf16.msra.mxu1 %v4206_v18  ;;  %v4214_v18 = vld [vmem:[%s5340_s6 + $0x88] sm:$0xff]  }
 0x15d   :  { %3926 = vmatprep.subr.bf16.mxu1 %v4341_v1 }
 0x15f   :  { %3219 = vmatmul.mubr.msk.bf16.gmra.mrb[16].mxu1 %vm588_vm4, %v4634_v3  ;;  %v4208_v3 = vld [vmem:[%s5340_s6 + $0x158] sm:$0xff]  }
 0x160   :  { %1279 = vmatprep.mubr.bf16.mxu1 %v4343_v46  ;;  %3927 = vmatpush3.bf16.msra.mxu1 %v4207_v35 }
 0x161   :  { %3928 = vmatprep.subr.bf16.mxu1 %v4341_v1 }
 0x164   :  { %3929 = vmatpush3.bf16.msra.mxu1 %v4208_v3 }
 0x165   :  { %3930 = vmatprep.subr.bf16.mxu1 %v4341_v1 }
 0x167   :  { %3220 = vmatmul.mubr.msk.bf16.gmra.mrb[20].mxu1 %vm588_vm4, %v4665_v21  ;;  %v4212_v21 = vld [vmem:[%s5340_s6 + $0x178] sm:$0xff]  }
 0x168   :  { %1289 = vmatprep.mubr.bf16.mxu1 %v4343_v46  ;;  %3931 = vmatpush3.bf16.msra.mxu1 %v4209_v19 }
 0x169   :  { %3932 = vmatprep.subr.bf16.mxu1 %v4341_v1 }
 0x16c   :  { %3933 = vmatpush3.bf16.msra.mxu1 %v4210_v20 }
 0x16d   :  { %3934 = vmatprep.subr.bf16.mxu1 %v4341_v1 }
 0x16f   :  { %3221 = vmatmul.mubr.msk.bf16.gmra.mrb[24].mxu1 %vm588_vm4, %v4685_v38  ;;  %v4240_v38 = vld [vmem:[%s5340_s6 + $0xf8] sm:$0xff]  }
 0x170   :  { %1299 = vmatprep.mubr.bf16.mxu1 %v4343_v46  ;;  %3631 = vmatpush3.bf16.msra.mxu0 %v4240_v38 }
 0x171   :  { %3647 = vmatprep.subr.bf16.mxu0 %v4242_v39 }
 0x177   :  { %3222 = vmatmul.mubr.msk.bf16.gmra.mrb[28].mxu1 %vm588_vm4, %v4701_v51 }
 0x178   :  { %1309 = vmatprep.mubr.bf16.mxu1 %v4343_v46  ;;  %v4211_v46 = vld [vmem:[%s5340_s6 + $0x170] sm:$0xff]  }
 0x179   :  { %3935 = vmatpush3.bf16.msra.mxu1 %v4211_v46 }
 0x17a   :  { %3936 = vmatprep.subr.bf16.mxu1 %v4341_v1 }
 0x17d   :  { %3937 = vmatpush3.bf16.msra.mxu1 %v4212_v21 }
 0x17e   :  { %3942 = vmatprep.subr.bf16.mxu1 %v4341_v1 }
 0x17f   :  { %3223 = vmatmul.mubr.msk.bf16.gmra.mrb[40].mxu1 %vm588_vm4, %v4718_v62 }
 0x180   :  { %3938 = vmatprep.mubr.msk.bf16.mxu1 %vm4342_vm0, %v4341_v1 }
 0x1db   :  { %v3868_v40 = vpop.f32.mrb[36].mxu0 }
 0x1dc   :  { %v772_v41 = vpop.f32.mrb[37].mxu0  ;;  %v4220_v40 = vld [vmem:[%s5340_s6 + $0xa8] sm:$0xff]  }
 0x1dd   :  { %v3869_v42 = vpop.f32.mrb[38].mxu0 }
 0x1de   :  { %v775_v43 = vpop.f32.mrb[39].mxu0 }
 0x1f2   :  { %v701_v44 = vpop.f32.mrb[32].mxu1 }
 0x1f3   :  { %v702_v45 = vpop.f32.mrb[33].mxu1  ;;  %v1429_v44 = vsub.s32 0, %v4898_v53 }
 0x1f4   :  { %v703_v47 = vpop.f32.mrb[34].mxu1 }
 0x1f5   :  { %v704_v50 = vpop.f32.mrb[35].mxu1  ;;  %v1433_v47 = vsub.s32 1, %v4898_v53 }
 0x1f6   :  { %v4226_v50 = vld [vmem:[%s5340_s6 + $0xb8] sm:$0xff]  }
 0x1f7   :  { %v3894_v51 = vpop.f32.mrb[40].mxu0 }
 0x1f8   :  { %v1071_v52 = vpop.f32.mrb[41].mxu0  ;;  %v4949_v51 = vrot.slane %v4904_v59, %v1429_v44 }
 0x1f9   :  { %v1072_v54 = vadd.f32 %v1071_v52, %v772_v41  ;;  %v3895_v55 = vpop.f32.mrb[42].mxu0  ;;  %v4223_v41 = vld [vmem:[%s5340_s6 + $0xb0] sm:$0xff]   ;;  %v4952_v52 = vrot.slane %v4904_v59, %v1433_v47 }
 0x1fa   :  { %v1074_v56 = vpop.f32.mrb[43].mxu0 }
 0x1fb   :  { %v1075_v57 = vadd.f32 %v1074_v56, %v775_v43 }
 0x203   :  { %v3912_v61 = vpop.f32.mrb[28].mxu0 }
 0x204   :  { %v1450_v62 = vadd.f32 %v3912_v61, %v1438_v60  ;;  %v1350_v63 = vpop.f32.mrb[29].mxu0  ;;  %v4232_v61 = vld [vmem:[%s5340_s6 + $0x208] sm:$0xff]  }
 0x205   :  { %v1444_v48 = vadd.f32 %v1438_v60, %v1350_v63  ;;  %v3913_v0 = vpop.f32.mrb[30].mxu0 }
 0x206   :  { %v1453_v2 = vadd.f32 %v3913_v0, %v1438_v60  ;;  %v1353_v4 = vpop.f32.mrb[31].mxu0  ;;  %v1480_v6 = vmax.f32 %v1450_v62, 0.0 }
 0x207   :  { %v1447_v5 = vadd.f32 %v1438_v60, %v1353_v4  ;;  %v1474_v8 = vmax.f32 %v1444_v48, 0.0 }
 0x208   :  { %v1483_v7 = vmax.f32 %v1453_v2, 0.0 }
 0x209   :  { %v1477_v9 = vmax.f32 %v1447_v5, 0.0  ;;  %v4235_v5 = vld [vmem:[%s5340_s6 + $0x210] sm:$0xff]  }
 0x20a   :  { %v1507_v11 = vpack.c.bf16 %v1483_v7, %v1480_v6 }
 0x20b   :  { %v1504_v12 = vpack.c.bf16 %v1477_v9, %v1474_v8  ;;  %v3916_v13 = vpop.f32.mrb[32].mxu0 }
 0x20c   :  { %v1462_v14 = vadd.f32 %v3916_v13, %v1438_v60  ;;  %v1366_v15 = vpop.f32.mrb[33].mxu0  ;;  %3939 = vmatmul.mubr.bf16.vlgmr.msra.gmra.mrb[44].mxu1 %v1507_v11 }
 0x20d   :  { %v1456_v16 = vadd.f32 %v1438_v60, %v1366_v15  ;;  %3943 = vmatpush3.bf16.msra.mxu1 %v4213_v10  ;;  %v3917_v17 = vpop.f32.mrb[34].mxu0  ;;  %3958 = vmatprep.mubr.msk.bf16.mxu1 %vm4342_vm0, %v4341_v1 }
 0x20e   :  { %v1465_v35 = vadd.f32 %v3917_v17, %v1438_v60  ;;  %v1369_v3 = vpop.f32.mrb[35].mxu0  ;;  %3944 = vmatprep.subr.bf16.mxu1 %v4341_v1  ;;  %v1492_v20 = vmax.f32 %v1462_v14, 0.0  ;;  %v4238_v14 = vld [vmem:[%s5340_s6 + $0x218] sm:$0xff]  }
 0x20f   :  { %v1459_v19 = vadd.f32 %v1438_v60, %v1369_v3  ;;  %v1486_v21 = vmax.f32 %v1456_v16, 0.0 }
 0x210   :  { %v1495_v46 = vmax.f32 %v1465_v35, 0.0 }
 0x211   :  { %v1489_v22 = vmax.f32 %v1459_v19, 0.0  ;;  %3945 = vmatpush3.bf16.msra.mxu1 %v4214_v18  ;;  %v4241_v19 = vld [vmem:[%s5340_s6 + $0x220] sm:$0xff]  }
 0x212   :  { %v4919_v24 = vpack.c.bf16 %v1495_v46, %v1492_v20  ;;  %3946 = vmatprep.subr.bf16.mxu1 %v4341_v1 }
 0x213   :  { %v4922_v25 = vpack.c.bf16 %v1489_v22, %v1486_v21  ;;  %v3920_v26 = vpop.f32.mrb[44].mxu0  ;;  %v4243_v21 = vld [vmem:[%s5340_s6] sm:$0xff]  }
 0x214   :  { %v1382_v27 = vpop.f32.mrb[45].mxu0  ;;  %v4245_v26 = vld [vmem:[%s5340_s6 + $0x48] sm:$0xff]  }
 0x215   :  { %v1421_v28 = vadd.f32 %v1382_v27, %v1072_v54  ;;  %3947 = vmatpush3.bf16.msra.mxu1 %v4215_v23  ;;  %v3921_v29 = vpop.f32.mrb[46].mxu0  ;;  %v4229_v54 = vld [vmem:[%s5340_s6 + $0x200] sm:$0xff]  }
 0x216   :  { %v1385_v31 = vpop.f32.mrb[47].mxu0  ;;  %3948 = vmatprep.subr.bf16.mxu1 %v4341_v1 }
 0x217   :  { %v1468_v32 = vadd.f32 %v1438_v60, %v1421_v28  ;;  %v1424_v33 = vadd.f32 %v1385_v31, %v1075_v57  ;;  %v4244_v31 = vld [vmem:[%s5340_s6 + $0x228] sm:$0xff]  }
 0x219   :  { %v1471_v34 = vadd.f32 %v1438_v60, %v1424_v33  ;;  %3949 = vmatpush3.bf16.msra.mxu1 %v4216_v30  ;;  %v1498_v36 = vmax.f32 %v1468_v32, 0.0  ;;  %v4246_v33 = vld [vmem:[%s5340_s6 + $0x8] sm:$0xff]  }
 0x21a   :  { %3950 = vmatprep.subr.bf16.mxu1 %v4341_v1 }
 0x21b   :  { %v1501_v38 = vmax.f32 %v1471_v34, 0.0 }
 0x21d   :  { %v4932_v39 = vpack.c.bf16 %v1501_v38, %v1498_v36  ;;  %3951 = vmatpush3.bf16.msra.mxu1 %v4217_v37  ;;  %v4248_v36 = vld [vmem:[%s5340_s6 + $0x50] sm:$0xff]  }
 0x21e   :  { %3952 = vmatprep.subr.bf16.mxu1 %v4341_v1 }
 0x221   :  { %3953 = vmatpush3.bf16.msra.mxu1 %v4220_v40 }
 0x222   :  { %v1000_v42 = vpop.f32.mrb[36].mxu1  ;;  %3954 = vmatprep.subr.bf16.mxu1 %v4341_v1 }
 0x223   :  { %v1001_v43 = vpop.f32.mrb[37].mxu1  ;;  %v4247_v42 = vld [vmem:[%s5340_s6 + $0x230] sm:$0xff]  }
 0x224   :  { %v1002_v45 = vpop.f32.mrb[38].mxu1 }
 0x225   :  { %3955 = vmatpush3.bf16.msra.mxu1 %v4223_v41  ;;  %v1003_v49 = vpop.f32.mrb[39].mxu1  ;;  %v4249_v45 = vld [vmem:[%s5340_s6 + $0x10] sm:$0xff]  }
 0x226   :  { %3956 = vmatprep.subr.bf16.mxu1 %v4341_v1 }
 0x229   :  { %3957 = vmatpush3.bf16.msra.mxu1 %v4226_v50  ;;  %v4251_v50 = vld [vmem:[%s5340_s6 + $0x58] sm:$0xff]  }
 0x22a   :  { %v1261_v53 = vpop.f32.mrb[12].mxu1  ;;  %3962 = vmatprep.subr.bf16.mxu1 %v4341_v1 }
 0x22b   :  { %v1442_v55 = vadd.f32 %v4949_v51, %v1261_v53  ;;  %v1263_v56 = vpop.f32.mrb[13].mxu1 }
 0x22c   :  { %3959 = vmatmul.mubr.bf16.vlgmr.msra.gmra.mrb[48].mxu1 %v1504_v12  ;;  %v1443_v57 = vadd.f32 %v4952_v52, %v1263_v56  ;;  %v1265_v58 = vpop.f32.mrb[14].mxu1 }
 0x22d   :  { %3963 = vmatpush3.bf16.msra.mxu1 %v4229_v54  ;;  %v1445_v60 = vadd.f32 %v4949_v51, %v1265_v58  ;;  %v1267_v59 = vpop.f32.mrb[15].mxu1  ;;  %3978 = vmatprep.mubr.msk.bf16.mxu1 %vm4342_vm0, %v4341_v1  ;;  %v1472_v63 = vmax.f32 %v1442_v55, 0.0 }
 0x22e   :  { %v1446_v62 = vadd.f32 %v4952_v52, %v1267_v59  ;;  %3964 = vmatprep.subr.bf16.mxu1 %v4341_v1  ;;  %v1473_v0 = vmax.f32 %v1443_v57, 0.0  ;;  %v4250_v57 = vld [vmem:[%s5340_s6 + $0x238] sm:$0xff]  }
 0x22f   :  { %v1475_v48 = vmax.f32 %v1445_v60, 0.0  ;;  %v4252_v60 = vld [vmem:[%s5340_s6 + $0x18] sm:$0xff]  }
 0x230   :  { %v1476_v2 = vmax.f32 %v1446_v62, 0.0  ;;  %v4254_v62 = vld [vmem:[%s5340_s6 + $0x60] sm:$0xff]  }
 0x231   :  { %v4968_v4 = vpack.c.bf16 %v1475_v48, %v1472_v63  ;;  %3965 = vmatpush3.bf16.msra.mxu1 %v4232_v61 }
 0x232   :  { %v1503_v6 = vpack.c.bf16 %v1476_v2, %v1473_v0  ;;  %v1271_v7 = vpop.f32.mrb[16].mxu1  ;;  %3966 = vmatprep.subr.bf16.mxu1 %v4341_v1  ;;  %v4253_v2 = vld [vmem:[%s5340_s6 + $0x2c0] sm:$0xff]  }
 0x233   :  { %v1448_v8 = vadd.f32 %v4949_v51, %v1271_v7  ;;  %v1273_v9 = vpop.f32.mrb[17].mxu1  ;;  %v4255_v7 = vld [vmem:[%s5340_s6 + $0x20] sm:$0xff]  }
 0x234   :  { %v1449_v10 = vadd.f32 %v4952_v52, %v1273_v9  ;;  %v1275_v11 = vpop.f32.mrb[18].mxu1 }
 0x235   :  { %3967 = vmatpush3.bf16.msra.mxu1 %v4235_v5  ;;  %v1451_v12 = vadd.f32 %v4949_v51, %v1275_v11  ;;  %v1277_v13 = vpop.f32.mrb[19].mxu1  ;;  %v1478_v16 = vmax.f32 %v1448_v8, 0.0 }
 0x236   :  { %v1452_v15 = vadd.f32 %v4952_v52, %v1277_v13  ;;  %3968 = vmatprep.subr.bf16.mxu1 %v4341_v1  ;;  %v1479_v18 = vmax.f32 %v1449_v10, 0.0  ;;  %v4257_v10 = vld [vmem:[%s5340_s6 + $0x68] sm:$0xff]  }
 0x237   :  { %v1481_v17 = vmax.f32 %v1451_v12, 0.0 }
 0x238   :  { %v1482_v35 = vmax.f32 %v1452_v15, 0.0  ;;  %v4256_v15 = vld [vmem:[%s5340_s6 + $0x2c8] sm:$0xff]  }
 0x239   :  { %v1505_v3 = vpack.c.bf16 %v1481_v17, %v1478_v16  ;;  %3969 = vmatpush3.bf16.msra.mxu1 %v4238_v14 }
 0x23a   :  { %v1506_v20 = vpack.c.bf16 %v1482_v35, %v1479_v18  ;;  %v1281_v46 = vpop.f32.mrb[20].mxu1  ;;  %3970 = vmatprep.subr.bf16.mxu1 %v4341_v1 }
 0x23b   :  { %v1454_v22 = vadd.f32 %v4949_v51, %v1281_v46  ;;  %v1283_v23 = vpop.f32.mrb[21].mxu1  ;;  %v4261_v46 = vld [vmem:[%s5340_s6 + $0x30] sm:$0xff]  }
 0x23c   :  { %v1455_v27 = vadd.f32 %v4952_v52, %v1283_v23  ;;  %v1285_v28 = vpop.f32.mrb[22].mxu1  ;;  %1790 = vmatprep.mubr.bf16.mxu0 %v1506_v20 }
 0x23d   :  { %3971 = vmatpush3.bf16.msra.mxu1 %v4241_v19  ;;  %v1457_v29 = vadd.f32 %v4949_v51, %v1285_v28  ;;  %v1287_v30 = vpop.f32.mrb[23].mxu1  ;;  %1791 = vmatmul.mubr.bf16.vlgmr.msra.gmra.mrb[48].mxu0 %v1505_v3  ;;  %v1484_v34 = vmax.f32 %v1454_v22, 0.0  ;;  %v4263_v22 = vld [vmem:[%s5340_s6 + $0x78] sm:$0xff]  }
 0x23e   :  { %v1458_v32 = vadd.f32 %v4952_v52, %v1287_v30  ;;  %3648 = vmatpush3.bf16.msra.mxu0 %v4243_v21  ;;  %2016 = vmatprep.mubr.bf16.mxu0 %v1503_v6  ;;  %v1485_v38 = vmax.f32 %v1455_v27, 0.0  ;;  %v4262_v27 = vld [vmem:[%s5340_s6 + $0x2d8] sm:$0xff]   ;;  %v4266_v30 = vld [vmem:[%s5340_s6 + $0x1c0] sm:$0xff]  }
 0x23f   :  { %v1487_v37 = vmax.f32 %v1457_v29, 0.0  ;;  %3972 = vmatprep.subr.bf16.mxu1 %v4341_v1  ;;  %3649 = vmatprep.subr.bf16.mxu0 %v4245_v26  ;;  %v4264_v29 = vld [vmem:[%s5340_s6 + $0x38] sm:$0xff]  }
 0x240   :  { %v1488_v40 = vmax.f32 %v1458_v32, 0.0  ;;  %v4267_v32 = vld [vmem:[%s5340_s6 + $0x180] sm:$0xff]  }
 0x241   :  { %v5006_v41 = vpack.c.bf16 %v1487_v37, %v1484_v34  ;;  %3973 = vmatpush3.bf16.msra.mxu1 %v4244_v31  ;;  %v4265_v31 = vld [vmem:[%s5340_s6 + $0x2e0] sm:$0xff]   ;;  %v4268_v34 = vld [vmem:[%s5340_s6 + $0x2e8] sm:$0xff]  }
 0x242   :  { %v5011_v43 = vpack.c.bf16 %v1488_v40, %v1485_v38  ;;  %3650 = vmatpush3.bf16.msra.mxu0 %v4246_v33  ;;  %v1291_v44 = vpop.f32.mrb[24].mxu1  ;;  %3974 = vmatprep.subr.bf16.mxu1 %v4341_v1  ;;  %v4269_v33 = vld [vmem:[%s5340_s6 + $0x1c8] sm:$0xff]   ;;  %v4273_v38 = vld [vmem:[%s5340_s6 + $0x190] sm:$0xff]   ;;  %v4275_v40 = vld [vmem:[%s5340_s6 + $0x1d8] sm:$0xff]  }
 0x243   :  { %v1460_v47 = vadd.f32 %v4949_v51, %v1291_v44  ;;  %v1293_v49 = vpop.f32.mrb[25].mxu1  ;;  %3651 = vmatprep.subr.bf16.mxu0 %v4248_v36  ;;  %v4270_v37 = vld [vmem:[%s5340_s6 + $0x188] sm:$0xff]   ;;  %v4272_v36 = vld [vmem:[%s5340_s6 + $0x1d0] sm:$0xff]   ;;  %v4278_v44 = vld [vmem:[%s5340_s6 + $0x1e0] sm:$0xff]  }
 0x244   :  { %v1461_v54 = vadd.f32 %v4952_v52, %v1293_v49  ;;  %v1295_v53 = vpop.f32.mrb[26].mxu1  ;;  %v4281_v49 = vld [vmem:[%s5340_s6 + $0x1e8] sm:$0xff]  }
 0x245   :  { %3975 = vmatpush3.bf16.msra.mxu1 %v4247_v42  ;;  %v1463_v55 = vadd.f32 %v4949_v51, %v1295_v53  ;;  %v1297_v56 = vpop.f32.mrb[27].mxu1  ;;  %v1490_v59 = vmax.f32 %v1460_v47, 0.0  ;;  %v4274_v42 = vld [vmem:[%s5340_s6 + $0x2f8] sm:$0xff]   ;;  %v4279_v47 = vld [vmem:[%s5340_s6 + $0x1a0] sm:$0xff]   ;;  %v4283_v53 = vld [vmem:[%s5340_s6 + $0x390] sm:$0xff]  }
 0x246   :  { %v1464_v58 = vadd.f32 %v4952_v52, %v1297_v56  ;;  %3652 = vmatpush3.bf16.msra.mxu0 %v4249_v45  ;;  %3976 = vmatprep.subr.bf16.mxu1 %v4341_v1  ;;  %v1491_v63 = vmax.f32 %v1461_v54, 0.0  ;;  %v4277_v45 = vld [vmem:[%s5340_s6 + $0x380] sm:$0xff]   ;;  %v4282_v54 = vld [vmem:[%s5340_s6 + $0x1a8] sm:$0xff]   ;;  %v4287_v56 = vld [vmem:[%s5340_s6 + $0x1f8] sm:$0xff]  }
 0x247   :  { %v1493_v61 = vmax.f32 %v1463_v55, 0.0  ;;  %3653 = vmatprep.subr.bf16.mxu0 %v4251_v50  ;;  %v4280_v50 = vld [vmem:[%s5340_s6 + $0x388] sm:$0xff]   ;;  %v4285_v55 = vld [vmem:[%s5340_s6 + $0x1b0] sm:$0xff]  }
 0x248   :  { %v1494_v48 = vmax.f32 %v1464_v58, 0.0  ;;  %v4288_v58 = vld [vmem:[%s5340_s6 + $0x1b8] sm:$0xff]  }
 0x249   :  { %v5034_v0 = vpack.c.bf16 %v1493_v61, %v1490_v59  ;;  %3977 = vmatpush3.bf16.msra.mxu1 %v4250_v57  ;;  %v4286_v57 = vld [vmem:[%s5340_s6 + $0x398] sm:$0xff]   ;;  %v4289_v59 = vld [vmem:[%s5340_s6 + $0x3a0] sm:$0xff]  }
 0x24a   :  { %v5039_v5 = vpack.c.bf16 %v1494_v48, %v1491_v63  ;;  %3654 = vmatpush3.bf16.msra.mxu0 %v4252_v60  ;;  %v1301_v6 = vpop.f32.mrb[28].mxu1  ;;  %3982 = vmatprep.subr.bf16.mxu1 %v4341_v1  ;;  %v4290_v60 = vld [vmem:[%s5340_s6 + $0x280] sm:$0xff]   ;;  %v4292_v63 = vld [vmem:[%s5340_s6 + $0x3a8] sm:$0xff]  }
 0x24b   :  { %v1466_v8 = vadd.f32 %v4949_v51, %v1301_v6  ;;  %v1303_v9 = vpop.f32.mrb[29].mxu1  ;;  %3655 = vmatprep.subr.bf16.mxu0 %v4254_v62  ;;  %v4291_v61 = vld [vmem:[%s5340_s6 + $0x240] sm:$0xff]   ;;  %v4293_v62 = vld [vmem:[%s5340_s6 + $0x288] sm:$0xff]   ;;  %v4299_v6 = vld [vmem:[%s5340_s6 + $0x298] sm:$0xff]  }
 0x24c   :  { %3979 = vmatmul.mubr.bf16.vlgmr.msra.gmra.mrb[52].mxu1 %v4922_v25  ;;  %v1467_v11 = vadd.f32 %v4952_v52, %v1303_v9  ;;  %v1305_v12 = vpop.f32.mrb[30].mxu1  ;;  %v4258_v25 = vld [vmem:[%s5340_s6 + $0x28] sm:$0xff]   ;;  %v4301_v9 = vld [vmem:[%s5340_s6 + $0x2a0] sm:$0xff]  }
 0x24d   :  { %3983 = vmatpush3.bf16.msra.mxu1 %v4253_v2  ;;  %v1469_v13 = vadd.f32 %v4949_v51, %v1305_v12  ;;  %v1307_v14 = vpop.f32.mrb[31].mxu1  ;;  %3998 = vmatprep.mubr.msk.bf16.mxu1 %vm4342_vm0, %v4341_v1  ;;  %v1496_v17 = vmax.f32 %v1466_v8, 0.0  ;;  %v4260_v51 = vld [vmem:[%s5340_s6 + $0x70] sm:$0xff]   ;;  %v4294_v48 = vld [vmem:[%s5340_s6 + $0x248] sm:$0xff]   ;;  %v4300_v8 = vld [vmem:[%s5340_s6 + $0x258] sm:$0xff]  }
 0x24e   :  { %v1470_v16 = vadd.f32 %v4952_v52, %v1307_v14  ;;  %3656 = vmatpush3.bf16.msra.mxu0 %v4255_v7  ;;  %3984 = vmatprep.subr.bf16.mxu1 %v4341_v1  ;;  %v1497_v35 = vmax.f32 %v1467_v11, 0.0  ;;  %v4259_v52 = vld [vmem:[%s5340_s6 + $0x2d0] sm:$0xff]   ;;  %v4298_v7 = vld [vmem:[%s5340_s6 + $0x3b8] sm:$0xff]   ;;  %v4303_v11 = vld [vmem:[%s5340_s6 + $0x2a8] sm:$0xff]  }
 0x24f   :  { %v1499_v18 = vmax.f32 %v1469_v13, 0.0  ;;  %3657 = vmatprep.subr.bf16.mxu0 %v4257_v10  ;;  %v4296_v2 = vld [vmem:[%s5340_s6 + $0x290] sm:$0xff]   ;;  %v4302_v10 = vld [vmem:[%s5340_s6 + $0x260] sm:$0xff]   ;;  %v4304_v12 = vld [vmem:[%s5340_s6 + $0x268] sm:$0xff]  }
 0x250   :  { %v1500_v3 = vmax.f32 %v1470_v16, 0.0  ;;  %v4305_v13 = vld [vmem:[%s5340_s6 + $0x2b0] sm:$0xff]   ;;  %v4309_v16 = vld [vmem:[%s5340_s6 + $0x340] sm:$0xff]  }
 0x251   :  { %v5065_v19 = vpack.c.bf16 %v1499_v18, %v1496_v17  ;;  %3985 = vmatpush3.bf16.msra.mxu1 %v4256_v15  ;;  %v4306_v14 = vld [vmem:[%s5340_s6 + $0x270] sm:$0xff]   ;;  %v4308_v15 = vld [vmem:[%s5340_s6 + $0x278] sm:$0xff]   ;;  %v4311_v17 = vld [vmem:[%s5340_s6 + $0x348] sm:$0xff]  }
 0x252   :  { %v5070_v20 = vpack.c.bf16 %v1500_v3, %v1497_v35  ;;  %3658 = vmatpush3.bf16.msra.mxu0 %v4258_v25  ;;  %3986 = vmatprep.subr.bf16.mxu1 %v4341_v1  ;;  %v1311_v21 = vpop.f32.mrb[40].mxu1  ;;  %v4310_v25 = vld [vmem:[%s5340_s6 + $0x300] sm:$0xff]   ;;  %v4312_v18 = vld [vmem:[%s5340_s6 + $0x308] sm:$0xff]   ;;  %v4314_v35 = vld [vmem:[%s5340_s6 + $0x310] sm:$0xff]  }
 0x253   :  { %3659 = vmatprep.subr.bf16.mxu0 %v4260_v51  ;;  %v1312_v23 = vpop.f32.mrb[41].mxu1  ;;  %v4313_v51 = vld [vmem:[%s5340_s6 + $0x350] sm:$0xff]   ;;  %v4316_v3 = vld [vmem:[%s5340_s6 + $0x318] sm:$0xff]   ;;  %v4320_v21 = vld [vmem:[%s5340_s6 + $0x328] sm:$0xff]  }
 0x254   :  { %v1313_v26 = vpop.f32.mrb[42].mxu1  ;;  %v4322_v23 = vld [vmem:[%s5340_s6 + $0x330] sm:$0xff]  }
 0x255   :  { %3987 = vmatpush3.bf16.msra.mxu1 %v4259_v52  ;;  %v1314_v28 = vpop.f32.mrb[43].mxu1  ;;  %v4317_v52 = vld [vmem:[%s5340_s6 + $0x360] sm:$0xff]   ;;  %v4323_v26 = vld [vmem:[%s5340_s6 + $0x378] sm:$0xff]  }
 0x256   :  { %3660 = vmatpush3.bf16.msra.mxu0 %v4261_v46  ;;  %3988 = vmatprep.subr.bf16.mxu1 %v4341_v1  ;;  %v4319_v46 = vld [vmem:[%s5340_s6 + $0x368] sm:$0xff]  }
 0x257   :  { %3661 = vmatprep.subr.bf16.mxu0 %v4263_v22  ;;  %v4321_v22 = vld [vmem:[%s5340_s6 + $0x370] sm:$0xff]  }
 0x259   :  { %3989 = vmatpush3.bf16.msra.mxu1 %v4262_v27  ;;  %v4324_v27 = vld [vmem:[%s5340_s6 + $0x338] sm:$0xff]  }
 0x25a   :  { %3662 = vmatpush3.bf16.msra.mxu0 %v4264_v29  ;;  %3990 = vmatprep.subr.bf16.mxu1 %v4341_v1 }
 0x25b   :  { %3678 = vmatprep.subr.bf16.mxu0 %v4266_v30 }
 0x25d   :  { %3991 = vmatpush3.bf16.msra.mxu1 %v4265_v31  ;;  %2017 = vmatmul.mubr.bf16.vlgmr.msra.gmra.mrb[52].mxu0 %v4968_v4  ;;  %v4271_v4 = vld [vmem:[%s5340_s6 + $0x2f0] sm:$0xff]  }
 0x25e   :  { %3679 = vmatpush3.bf16.msra.mxu0 %v4267_v32  ;;  %2291 = vmatprep.mubr.bf16.mxu0 %v5011_v43  ;;  %v4276_v43 = vld [vmem:[%s5340_s6 + $0x198] sm:$0xff]   ;;  %v4325_v32 = vld [vmem:[%s5342_s8] sm:$0xff]  }
 0x25f   :  { %3992 = vmatprep.subr.bf16.mxu1 %v4341_v1  ;;  %3680 = vmatprep.subr.bf16.mxu0 %v4269_v33  ;;  %v4326_v33 = vld [vmem:[%s5342_s8 + $0x8] sm:$0xff]  }
 0x261   :  { %3993 = vmatpush3.bf16.msra.mxu1 %v4268_v34 }
 0x262   :  { %3681 = vmatpush3.bf16.msra.mxu0 %v4270_v37  ;;  %3994 = vmatprep.subr.bf16.mxu1 %v4341_v1 }
 0x263   :  { %3682 = vmatprep.subr.bf16.mxu0 %v4272_v36 }
 0x265   :  { %3995 = vmatpush3.bf16.msra.mxu1 %v4271_v4 }
 0x266   :  { %3683 = vmatpush3.bf16.msra.mxu0 %v4273_v38  ;;  %3996 = vmatprep.subr.bf16.mxu1 %v4341_v1  ;;  %v4328_v38 = vld [vmem:[%s5342_s8 + $0x18] sm:$0xff]  }
 0x267   :  { %3684 = vmatprep.subr.bf16.mxu0 %v4275_v40  ;;  %v4329_v40 = vld [vmem:[%s5342_s8 + $0x20] sm:$0xff]  }
 0x269   :  { %3997 = vmatpush3.bf16.msra.mxu1 %v4274_v42 }
 0x26a   :  { %3685 = vmatpush3.bf16.msra.mxu0 %v4276_v43  ;;  %4002 = vmatprep.subr.bf16.mxu1 %v4341_v1 }
 0x26b   :  { %3686 = vmatprep.subr.bf16.mxu0 %v4278_v44 }
 0x26c   :  { %3999 = vmatmul.mubr.bf16.vlgmr.msra.gmra.mrb[56].mxu1 %v4919_v24  ;;  %v4284_v24 = vld [vmem:[%s5340_s6 + $0x1f0] sm:$0xff]  }
 0x26d   :  { %4003 = vmatpush3.bf16.msra.mxu1 %v4277_v45  ;;  %4018 = vmatprep.mubr.msk.bf16.mxu1 %vm4342_vm0, %v4341_v1 }
 0x26e   :  { %3687 = vmatpush3.bf16.msra.mxu0 %v4279_v47  ;;  %4004 = vmatprep.subr.bf16.mxu1 %v4341_v1  ;;  %v4330_v47 = vld [vmem:[%s5342_s8 + $0x28] sm:$0xff]  }
 0x26f   :  { %3688 = vmatprep.subr.bf16.mxu0 %v4281_v49 }
 0x271   :  { %4005 = vmatpush3.bf16.msra.mxu1 %v4280_v50 }
 0x272   :  { %3689 = vmatpush3.bf16.msra.mxu0 %v4282_v54  ;;  %4006 = vmatprep.subr.bf16.mxu1 %v4341_v1 }
 0x273   :  { %3690 = vmatprep.subr.bf16.mxu0 %v4284_v24 }
 0x275   :  { %4007 = vmatpush3.bf16.msra.mxu1 %v4283_v53  ;;  %v4331_v53 = vld [vmem:[%s5342_s8 + $0x30] sm:$0xff]  }
 0x276   :  { %3691 = vmatpush3.bf16.msra.mxu0 %v4285_v55  ;;  %4008 = vmatprep.subr.bf16.mxu1 %v4341_v1  ;;  %v4332_v55 = vld [vmem:[%s5342_s8 + $0x38] sm:$0xff]  }
 0x277   :  { %3692 = vmatprep.subr.bf16.mxu0 %v4287_v56 }
 0x279   :  { %4009 = vmatpush3.bf16.msra.mxu1 %v4286_v57 }
 0x27a   :  { %3693 = vmatpush3.bf16.msra.mxu0 %v4288_v58  ;;  %4010 = vmatprep.subr.bf16.mxu1 %v4341_v1 }
 0x27b   :  { %3709 = vmatprep.subr.bf16.mxu0 %v4290_v60 }
 0x27d   :  { %4011 = vmatpush3.bf16.msra.mxu1 %v4289_v59  ;;  %2292 = vmatmul.mubr.bf16.vlgmr.msra.gmra.mrb[56].mxu0 %v5006_v41  ;;  %v4295_v41 = vld [vmem:[%s5340_s6 + $0x3b0] sm:$0xff]  }
 0x27e   :  { %3710 = vmatpush3.bf16.msra.mxu0 %v4291_v61  ;;  %2568 = vmatprep.mubr.bf16.mxu0 %v5039_v5  ;;  %v4297_v5 = vld [vmem:[%s5340_s6 + $0x250] sm:$0xff]  }
 0x27f   :  { %4012 = vmatprep.subr.bf16.mxu1 %v4341_v1  ;;  %3711 = vmatprep.subr.bf16.mxu0 %v4293_v62 }
 0x281   :  { %4013 = vmatpush3.bf16.msra.mxu1 %v4292_v63 }
 0x282   :  { %3712 = vmatpush3.bf16.msra.mxu0 %v4294_v48  ;;  %4014 = vmatprep.subr.bf16.mxu1 %v4341_v1 }
 0x283   :  { %3713 = vmatprep.subr.bf16.mxu0 %v4296_v2 }
 0x285   :  { %4015 = vmatpush3.bf16.msra.mxu1 %v4295_v41 }
 0x286   :  { %3714 = vmatpush3.bf16.msra.mxu0 %v4297_v5  ;;  %4016 = vmatprep.subr.bf16.mxu1 %v4341_v1 }
 0x287   :  { %3715 = vmatprep.subr.bf16.mxu0 %v4299_v6 }
 0x289   :  { %4017 = vmatpush3.bf16.msra.mxu1 %v4298_v7 }
 0x28a   :  { %3716 = vmatpush3.bf16.msra.mxu0 %v4300_v8 }
 0x28b   :  { %3717 = vmatprep.subr.bf16.mxu0 %v4301_v9 }
 0x28c   :  { %4019 = vmatmul.mubr.bf16.vlgmr.msra.gmra.mrb[60].mxu1 %v4932_v39  ;;  %v4307_v39 = vld [vmem:[%s5340_s6 + $0x2b8] sm:$0xff]  }
 0x28e   :  { %3718 = vmatpush3.bf16.msra.mxu0 %v4302_v10 }
 0x28f   :  { %3719 = vmatprep.subr.bf16.mxu0 %v4303_v11 }
 0x292   :  { %3720 = vmatpush3.bf16.msra.mxu0 %v4304_v12 }
 0x293   :  { %3721 = vmatprep.subr.bf16.mxu0 %v4305_v13 }
 0x296   :  { %3722 = vmatpush3.bf16.msra.mxu0 %v4306_v14 }
 0x297   :  { %3723 = vmatprep.subr.bf16.mxu0 %v4307_v39 }
 0x29a   :  { %3724 = vmatpush3.bf16.msra.mxu0 %v4308_v15 }
 0x29b   :  { %3740 = vmatprep.subr.bf16.mxu0 %v4309_v16 }
 0x29d   :  { %2569 = vmatmul.mubr.bf16.vlgmr.msra.gmra.mrb[60].mxu0 %v5034_v0  ;;  %v4315_v0 = vld [vmem:[%s5340_s6 + $0x358] sm:$0xff]  }
 0x29e   :  { %3741 = vmatpush3.bf16.msra.mxu0 %v4310_v25  ;;  %2845 = vmatprep.mubr.bf16.mxu0 %v5070_v20  ;;  %v4318_v20 = vld [vmem:[%s5340_s6 + $0x320] sm:$0xff]  }
 0x29f   :  { %3742 = vmatprep.subr.bf16.mxu0 %v4311_v17 }
 0x2a2   :  { %3743 = vmatpush3.bf16.msra.mxu0 %v4312_v18 }
 0x2a3   :  { %3744 = vmatprep.subr.bf16.mxu0 %v4313_v51 }
 0x2a6   :  { %3745 = vmatpush3.bf16.msra.mxu0 %v4314_v35 }
 0x2a7   :  { %3746 = vmatprep.subr.bf16.mxu0 %v4315_v0 }
 0x2aa   :  { %3747 = vmatpush3.bf16.msra.mxu0 %v4316_v3 }
 0x2ab   :  { %3748 = vmatprep.subr.bf16.mxu0 %v4317_v52 }
 0x2ae   :  { %3749 = vmatpush3.bf16.msra.mxu0 %v4318_v20 }
 0x2af   :  { %3750 = vmatprep.subr.bf16.mxu0 %v4319_v46 }
 0x2b2   :  { %3751 = vmatpush3.bf16.msra.mxu0 %v4320_v21 }
 0x2b3   :  { %3752 = vmatprep.subr.bf16.mxu0 %v4321_v22 }
 0x2b6   :  { %3753 = vmatpush3.bf16.msra.mxu0 %v4322_v23 }
 0x2b7   :  { %3754 = vmatprep.subr.bf16.mxu0 %v4323_v26 }
 0x2ba   :  { %3755 = vmatpush3.bf16.msra.mxu0 %v4324_v27 }
 0x2bb   :  { %4022 = vmatprep.subr.bf16.mxu0 %v4341_v1 }
 0x2bd   :  { %2846 = vmatmul.mubr.bf16.vlgmr.msra.gmra.mrb[64].mxu0 %v5065_v19  ;;  %v4327_v19 = vld [vmem:[%s5342_s8 + $0x10] sm:$0xff]  }
 0x2be   :  { %4038 = vmatprep.mubr.msk.bf16.mxu0 %vm4342_vm0, %v4341_v1  ;;  %4023 = vmatpush3.bf16.msra.mxu0 %v4325_v32 }
 0x2bf   :  { %4024 = vmatprep.subr.bf16.mxu0 %v4341_v1 }
 0x2c2   :  { %4025 = vmatpush3.bf16.msra.mxu0 %v4326_v33 }
 0x2c3   :  { %4026 = vmatprep.subr.bf16.mxu0 %v4341_v1 }
 0x2c6   :  { %4027 = vmatpush3.bf16.msra.mxu0 %v4327_v19 }
 0x2c7   :  { %4028 = vmatprep.subr.bf16.mxu0 %v4341_v1 }
 0x2ca   :  { %4029 = vmatpush3.bf16.msra.mxu0 %v4328_v38  ;;  %v3542_v38 = vld [vmem:[%s5343_s7] ss:$0 sm:$0xff] }
 0x2cb   :  { %4030 = vmatprep.subr.bf16.mxu0 %v4341_v1 }
 0x2ce   :  { %4031 = vmatpush3.bf16.msra.mxu0 %v4329_v40 }
 0x2cf   :  { %4032 = vmatprep.subr.bf16.mxu0 %v4341_v1 }
 0x2d2   :  { %4033 = vmatpush3.bf16.msra.mxu0 %v4330_v47 }
 0x2d3   :  { %4034 = vmatprep.subr.bf16.mxu0 %v4341_v1 }
 0x2d6   :  { %4035 = vmatpush3.bf16.msra.mxu0 %v4331_v53 }
 0x2d7   :  { %4036 = vmatprep.subr.bf16.mxu0 %v4341_v1 }
 0x2da   :  { %4037 = vmatpush3.bf16.msra.mxu0 %v4332_v55 }
 0x2df   :  { %v1833_v28 = vpop.f32.mrb[44].mxu1 }
 0x2e0   :  { %v3940_v29 = vpop.f32.mrb[45].mxu1 }
 0x2e1   :  { %v1836_v30 = vpop.f32.mrb[46].mxu1 }
 0x2e2   :  { %v3941_v31 = vpop.f32.mrb[47].mxu1 }
 0x2ff   :  { %v2059_v34 = vpop.f32.mrb[48].mxu1 }
 0x300   :  { %v3960_v37 = vpop.f32.mrb[49].mxu1 }
 0x301   :  { %v2062_v36 = vpop.f32.mrb[50].mxu1 }
 0x302   :  { %v3961_v4 = vpop.f32.mrb[51].mxu1 }
 0x310   :  { %v3632_v42 = vpop.f32.mrb[48].mxu0 }
 0x311   :  { %v3633_v43 = vpop.f32.mrb[49].mxu0 }
 0x312   :  { %v3634_v44 = vadd.f32 %v3633_v43, %v3632_v42  ;;  %v3635_v45 = vpop.f32.mrb[50].mxu0 }
 0x313   :  { %v3636_v49 = vpop.f32.mrb[51].mxu0 }
 0x314   :  { %v1834_v50 = vadd.f32 %v3634_v44, %v1833_v28  ;;  %v3637_v54 = vadd.f32 %v3636_v49, %v3635_v45  ;;  %v3543_v45 = vld [vmem:[%s5344_s9] ss:$0 sm:$0xff] }
 0x316   :  { %v1837_v24 = vadd.f32 %v3637_v54, %v1836_v30 }
 0x31f   :  { %v2334_v56 = vpop.f32.mrb[52].mxu1 }
 0x320   :  { %v3980_v57 = vpop.f32.mrb[53].mxu1 }
 0x321   :  { %v2337_v58 = vpop.f32.mrb[54].mxu1 }
 0x322   :  { %v3981_v60 = vpop.f32.mrb[55].mxu1 }
 0x330   :  { %v3663_v59 = vpop.f32.mrb[52].mxu0 }
 0x331   :  { %v3664_v61 = vpop.f32.mrb[53].mxu0 }
 0x332   :  { %v3665_v62 = vadd.f32 %v3664_v61, %v3663_v59  ;;  %v3666_v63 = vpop.f32.mrb[54].mxu0 }
 0x333   :  { %v3667_v48 = vpop.f32.mrb[55].mxu0 }
 0x334   :  { %v2019_v2 = vadd.f32 %v3665_v62, %v1834_v50  ;;  %v3668_v41 = vadd.f32 %v3667_v48, %v3666_v63 }
 0x336   :  { %v2060_v5 = vadd.f32 %v2059_v34, %v2019_v2  ;;  %v2022_v6 = vadd.f32 %v3668_v41, %v1837_v24 }
 0x338   :  { %v2063_v7 = vadd.f32 %v2062_v36, %v2022_v6 }
 0x33f   :  { %v2611_v1 = vpop.f32.mrb[56].mxu1 }
 0x340   :  { %v4000_v8 = vpop.f32.mrb[57].mxu1 }
 0x341   :  { %v2614_v9 = vpop.f32.mrb[58].mxu1 }
 0x342   :  { %v4001_v10 = vpop.f32.mrb[59].mxu1 }
 0x350   :  { %v3694_v11 = vpop.f32.mrb[56].mxu0 }
 0x351   :  { %v3695_v12 = vpop.f32.mrb[57].mxu0 }
 0x352   :  { %v3696_v13 = vadd.f32 %v3695_v12, %v3694_v11  ;;  %v3697_v14 = vpop.f32.mrb[58].mxu0 }
 0x353   :  { %v3698_v39 = vpop.f32.mrb[59].mxu0 }
 0x354   :  { %v2335_v15 = vadd.f32 %v3696_v13, %v2334_v56  ;;  %v3699_v16 = vadd.f32 %v3698_v39, %v3697_v14 }
 0x356   :  { %v2341_v25 = vadd.f32 %v2335_v15, %v2060_v5  ;;  %v2338_v17 = vadd.f32 %v3699_v16, %v2337_v58 }
 0x358   :  { %v2342_v18 = vadd.f32 %v2338_v17, %v2063_v7 }
 0x35f   :  { %v2888_v51 = vpop.f32.mrb[60].mxu1 }
 0x360   :  { %v4020_v35 = vpop.f32.mrb[61].mxu1 }
 0x361   :  { %v2891_v0 = vpop.f32.mrb[62].mxu1 }
 0x362   :  { %v4021_v3 = vpop.f32.mrb[63].mxu1 }
 0x370   :  { %v3725_v52 = vpop.f32.mrb[60].mxu0 }
 0x371   :  { %v3726_v20 = vpop.f32.mrb[61].mxu0 }
 0x372   :  { %v3727_v46 = vadd.f32 %v3726_v20, %v3725_v52  ;;  %v3728_v21 = vpop.f32.mrb[62].mxu0 }
 0x373   :  { %v3729_v22 = vpop.f32.mrb[63].mxu0 }
 0x374   :  { %v2612_v23 = vadd.f32 %v3727_v46, %v2611_v1  ;;  %v3730_v26 = vadd.f32 %v3729_v22, %v3728_v21 }
 0x376   :  { %v2618_v27 = vadd.f32 %v2612_v23, %v2341_v25  ;;  %v2615_v28 = vadd.f32 %v3730_v26, %v2614_v9 }
 0x378   :  { %v2619_v29 = vadd.f32 %v2615_v28, %v2342_v18 }
 0x390   :  { %v3756_v30 = vpop.f32.mrb[64].mxu0 }
 0x391   :  { %v3757_v31 = vpop.f32.mrb[65].mxu0 }
 0x392   :  { %v3758_v32 = vadd.f32 %v3757_v31, %v3756_v30  ;;  %v3759_v33 = vpop.f32.mrb[66].mxu0 }
 0x393   :  { %v3760_v34 = vpop.f32.mrb[67].mxu0 }
 0x394   :  { %v2889_v19 = vadd.f32 %v3758_v32, %v2888_v51  ;;  %v3761_v37 = vadd.f32 %v3760_v34, %v3759_v33 }
 0x396   :  { %v2895_v36 = vadd.f32 %v2889_v19, %v2618_v27  ;;  %v2892_v4 = vadd.f32 %v3761_v37, %v2891_v0 }
 0x398   :  { %v2896_v40 = vadd.f32 %v2892_v4, %v2619_v29  ;;  %v2904_v42 = vadd.f32 %v3542_v38, %v2895_v36 }
 0x39a   :  { %v2905_v43 = vadd.f32 %v3542_v38, %v2896_v40 }
 0x39c   :  { %v2906_v44 = vpack.c.bf16 %v2905_v43, %v2904_v42 }
 0x39e   :  { %4039 = vmatmul.mubr.bf16.vlgmr.msra.gmra.mrb[68].mxu0 %v2906_v44 }
 0x471   :  { %v3012_v47 = vpop.f32.mrb[68].mxu0 }
 0x472   :  { %v3013_v49 = vadd.f32 %v3543_v45, %v3012_v47  ;;  %v4040_v50 = vpop.f32.mrb[69].mxu0 }
 0x473   :  { %v3015_v54 = vpop.f32.mrb[70].mxu0 }
 0x474   :  { %3019 = vmax.xlane.f32.xlu0 %v3013_v49  ;;  %v4041_v24 = vpop.f32.mrb[71].mxu0  ;;  %v3016_v53 = vadd.f32 %v3543_v45, %v3015_v54 }
 0x478   :  { %3021 = vmax.xlane.f32.xlu0 %v3016_v53 }
 0x501   :  { %v3020_v55 = vpop.xlane.xlu0 %3019 }
 0x502   :  { %v3023_v56 = vsub.f32 %v3013_v49, %v3020_v55 }
 0x504   :  { %v3025_v57 = vmul.f32 1.442695, %v3023_v56 }
 0x505   :  { %v3022_v58 = vpop.xlane.xlu0 %3021 }
 0x506   :  { %4333 = vpow2.f32 %v3025_v57  ;;  %v3024_v60 = vsub.f32 %v3016_v53, %v3022_v58 }
 0x508   :  { %v3027_v59 = vmul.f32 1.442695, %v3024_v60 }
 0x50a   :  { %4335 = vpow2.f32 %v3027_v59 }
 0x510   :  { %v4334_v61 = vpop.eup %4333 }
 0x511   :  { %3029 = vadd.xlane.f32.xlu1 %v4334_v61 }
 0x514   :  { %v4336_v62 = vpop.eup %4335 }
 0x515   :  { %3031 = vadd.xlane.f32.xlu1 %v4336_v62 }
 0x59e   :  { %v3030_v63 = vpop.xlane.xlu1 %3029 }
 0x59f   :  { %4337 = vrcp.f32 %v3030_v63 }
 0x5a2   :  { %v3032_v48 = vpop.xlane.xlu1 %3031 }
 0x5a3   :  { %4339 = vrcp.f32 %v3032_v48 }
 0x5a9   :  { %v4338_v2 = vpop.eup %4337 }
 0x5aa   :  { %v3035_v41 = vmul.f32 %v4338_v2, %v4334_v61 }
 0x5ac   :  { %3037 = vst [vmem:[%s5345_s10] sm:$0xff] %v3035_v41 }
 0x5ad   :  { %v4340_v5 = vpop.eup %4339 }
 0x5ae   :  { %v3036_v6 = vmul.f32 %v4340_v5, %v4336_v62 }
 0x5b0   :  { %3038 = vst [vmem:[%s5345_s10 + $0x8] sm:$0xff] %v3036_v6 }

</bundles_post_ra>
